<compile_context>
chip_gen: v7x
topology: tpu7x:2x2x1
jax: 0.10.0
libtpu: 0.0.40
codegen_flags: <defaults>
</compile_context>

<pallas_src>
import jax
import jax.numpy as jnp
from jax.experimental import pallas as pl
from jax.experimental.pallas import tpu as pltpu

# Per-step row cap for large batches: big enough to keep the MXU streaming and
# amortize the ~0.35us/step overhead on single-TC v5e/v6e, tiny vs VMEM.
_MAX_BATCH_TILE = 512


def _pick_batch_tile(B):
    """Whole batch if it is small (latency-bound); otherwise the largest
    divisor of B that is <= _MAX_BATCH_TILE and a multiple of 16, which gives
    v7x >= 2 'parallel' grid steps once B >= 1024."""
    if B <= _MAX_BATCH_TILE:
        return B
    for t in range(min(_MAX_BATCH_TILE, B), 15, -16):
        if B % t == 0:
            return t
    return B  # ragged fallback: single full-batch step (always legal)


def _mlp_kernel(x_ref,
                w1_ref, b1_ref,
                w2_ref, b2_ref,
                w3_ref, b3_ref,
                w4_ref, b4_ref,
                w5_ref, b5_ref,
                w6_ref, b6_ref,
                o_ref):
    """Fused forward pass for one batch tile, entirely in VMEM.

    x arrives f32 and is cast to bf16 here; weights are bf16; biases are f32;
    accumulation is f32.
    """
    h = x_ref[...].astype(jnp.bfloat16)               # (tile, in_dim) bf16

    def linear_relu(h_bf16, w_ref, b_ref):
        # bf16 x bf16 -> f32 on the MXU.
        y = jnp.dot(h_bf16, w_ref[...], preferred_element_type=jnp.float32)
        y = y + b_ref[...]                            # f32 bias add (VPU)
        # TODO(synk): training-mode Dropout(p=0.1) would mask + 1/(1-p) scale
        # here via pltpu.prng_seed / pltpu.prng_random_bits; eval == identity.
        y = jnp.maximum(y, 0.0)                       # f32 ReLU
        return y.astype(jnp.bfloat16)                 # bf16 operand for next dot

    h = linear_relu(h, w1_ref, b1_ref)
    h = linear_relu(h, w2_ref, b2_ref)
    h = linear_relu(h, w3_ref, b3_ref)
    h = linear_relu(h, w4_ref, b4_ref)
    h = linear_relu(h, w5_ref, b5_ref)

    # Final linear (no activation, no dropout); written straight out as f32.
    out = jnp.dot(h, w6_ref[...], preferred_element_type=jnp.float32)
    o_ref[...] = (out + b6_ref[...]).astype(o_ref.dtype)


def prepare_params(params):
    """ONE-TIME prepare step: cast weights to bf16 (MXU operand dtype) and
    biases to f32 [1, out].  Call once at init and reuse the result; doing
    this per-forward was the dominant end-to-end cost at these shapes."""
    prepped = []
    for w, b in params:
        prepped.append((jnp.asarray(w, jnp.bfloat16),
                        jnp.asarray(b, jnp.float32).reshape(1, -1)))
    return prepped


def mlp_forward(x, prepped_params, *, batch_tile=None):
    """x: [B, input_dim] f32. prepped_params: output of prepare_params."""
    B, in_dim = x.shape
    out_dim = prepped_params[-1][0].shape[1]

    if batch_tile is None:
        batch_tile = _pick_batch_tile(B)
    assert B % batch_tile == 0, "batch must be divisible by batch_tile"
    grid = (B // batch_tile,)

    # ---- BlockSpecs ----------------------------------------------------------
    # x: batch-tiled, last dim == full array dim (32) -> no lane padding needed.
    in_specs = [pl.BlockSpec((batch_tile, in_dim), lambda i: (i, 0))]
    for (w, b) in prepped_params:
        # Weights/biases: whole-array blocks with a constant index_map ->
        # fetched once and kept resident in VMEM across all grid steps.
        # TODO(synk): use pipeline_mode=pl.Buffered(1) on these constant blocks
        # (single-buffer the resident weights) before scaling hidden_dim toward
        # v7x's 64 MiB VMEM; irrelevant at hidden=256 (~0.65 MB of weights).
        in_specs.append(pl.BlockSpec(w.shape, lambda i: (0, 0)))
        in_specs.append(pl.BlockSpec(b.shape, lambda i: (0, 0)))

    # Output written directly at its true width (out_dim); the handful of
    # masked stores is negligible vs. an extra XLA slice op around the kernel.
    out_specs = pl.BlockSpec((batch_tile, out_dim), lambda i: (i, 0))

    flat_args = [x]
    for (w, b) in prepped_params:
        flat_args.extend([w, b])

    # ---- cost estimate from true (unpadded) dims and real dtypes -------------
    flops = 0
    bytes_accessed = x.size * x.dtype.itemsize + B * out_dim * 4
    for (w, b) in prepped_params:
        flops += 2 * B * w.shape[0] * w.shape[1]
        bytes_accessed += w.size * w.dtype.itemsize + b.size * b.dtype.itemsize
    cost = pl.CostEstimate(flops=flops, transcendentals=0,
                           bytes_accessed=bytes_accessed)

    # Single-step grid: nothing to shard -> "arbitrary".  Multi-step grid:
    # "parallel" so v7x's two TensorCores split the batch tiles.
    dim_sem = ("arbitrary",) if grid[0] == 1 else ("parallel",)

    return pl.pallas_call(
        _mlp_kernel,
        out_shape=jax.ShapeDtypeStruct((B, out_dim), jnp.float32),
        grid_spec=pltpu.PrefetchScalarGridSpec(
            num_scalar_prefetch=0,
            grid=grid,
            in_specs=in_specs,
            out_specs=out_specs,
        ),
        compiler_params=pltpu.CompilerParams(
            dimension_semantics=dim_sem,
            vmem_limit_bytes=32 * 1024 * 1024,
        ),
        cost_estimate=cost,
    )(*flat_args)


def init_params(key, input_dim, hidden_dim, output_dim):
    """Deterministic PyTorch-style (Kaiming-uniform-ish) init for 6 linears."""
    dims = [(input_dim, hidden_dim),
            (hidden_dim, hidden_dim),
            (hidden_dim, hidden_dim),
            (hidden_dim, hidden_dim),
            (hidden_dim, hidden_dim),
            (hidden_dim, output_dim)]
    params = []
    for (fan_in, fan_out) in dims:
        key, kw, kb = jax.random.split(key, 3)
        bound = 1.0 / jnp.sqrt(fan_in)
        # Stored as [in, out] so the kernel computes x @ W directly.
        w = jax.random.uniform(kw, (fan_in, fan_out), jnp.float32, -bound, bound)
        b = jax.random.uniform(kb, (1, fan_out), jnp.float32, -bound, bound)
        params.append((w, b))
    return params


def reference_forward(x, params):
    """Pure-JAX reference mirroring the kernel's mixed precision:
    bf16 operands for every dot, f32 accumulation, f32 bias/ReLU."""
    h = x
    n = len(params)
    for i, (w, b) in enumerate(params):
        h = jnp.dot(h.astype(jnp.bfloat16), w.astype(jnp.bfloat16),
                    preferred_element_type=jnp.float32) + b
        if i < n - 1:
            h = jnp.maximum(h, 0.0)
    return h


if __name__ == "__main__":
    # Small shapes consistent with the module's forward. batch=128 fills MXU
    # rows and runs as a single grid step entirely in VMEM.
    batch, input_dim, hidden_dim, output_dim = 128, 32, 256, 8

    key = jax.random.PRNGKey(0)
    key, kx = jax.random.split(key)
    x = jax.random.normal(kx, (batch, input_dim), jnp.float32)
    params = init_params(key, input_dim, hidden_dim, output_dim)

    # One-time weight prep (bf16 cast), then the forward is a single XLA op.
    prepped = prepare_params(params)

    out = mlp_forward(x, prepped)
    out = jax.block_until_ready(out)

    ref = reference_forward(x, params)
    assert out.shape == (batch, output_dim)
    assert jnp.allclose(out, ref, atol=1e-2, rtol=1e-2), "mismatch vs reference"

    print("KERNEL_OK")
</pallas_src>

<mosaic_0001>
module attributes {stable_mosaic.version = 11 : i64} {
  func.func @_mlp_kernel(%arg0: i32, %arg1: memref<128x32xf32, #tpu.memory_space<vmem>>, %arg2: memref<32x256xbf16, #tpu.memory_space<vmem>>, %arg3: memref<1x256xf32, #tpu.memory_space<vmem>>, %arg4: memref<256x256xbf16, #tpu.memory_space<vmem>>, %arg5: memref<1x256xf32, #tpu.memory_space<vmem>>, %arg6: memref<256x256xbf16, #tpu.memory_space<vmem>>, %arg7: memref<1x256xf32, #tpu.memory_space<vmem>>, %arg8: memref<256x256xbf16, #tpu.memory_space<vmem>>, %arg9: memref<1x256xf32, #tpu.memory_space<vmem>>, %arg10: memref<256x256xbf16, #tpu.memory_space<vmem>>, %arg11: memref<1x256xf32, #tpu.memory_space<vmem>>, %arg12: memref<256x8xbf16, #tpu.memory_space<vmem>>, %arg13: memref<1x8xf32, #tpu.memory_space<vmem>>, %arg14: memref<128x8xf32, #tpu.memory_space<vmem>>) attributes {dimension_semantics = [#tpu.dimension_semantics<arbitrary>], iteration_bounds = array<i64: 1>, scalar_prefetch = 0 : i64, scratch_operands = 0 : i64, tpu.core_type = #tpu.core_type<tc>, window_params = [{transform_indices = @transform_0, window_bounds = array<i64: 128, 32>}, {pipeline_mode = #tpu.pipeline_mode<synchronous>, transform_indices = @transform_1, window_bounds = array<i64: 32, 256>}, {pipeline_mode = #tpu.pipeline_mode<synchronous>, transform_indices = @transform_2, window_bounds = array<i64: 1, 256>}, {pipeline_mode = #tpu.pipeline_mode<synchronous>, transform_indices = @transform_3, window_bounds = array<i64: 256, 256>}, {pipeline_mode = #tpu.pipeline_mode<synchronous>, transform_indices = @transform_4, window_bounds = array<i64: 1, 256>}, {pipeline_mode = #tpu.pipeline_mode<synchronous>, transform_indices = @transform_5, window_bounds = array<i64: 256, 256>}, {pipeline_mode = #tpu.pipeline_mode<synchronous>, transform_indices = @transform_6, window_bounds = array<i64: 1, 256>}, {pipeline_mode = #tpu.pipeline_mode<synchronous>, transform_indices = @transform_7, window_bounds = array<i64: 256, 256>}, {pipeline_mode = #tpu.pipeline_mode<synchronous>, transform_indices = @transform_8, window_bounds = array<i64: 1, 256>}, {pipeline_mode = #tpu.pipeline_mode<synchronous>, transform_indices = @transform_9, window_bounds = array<i64: 256, 256>}, {pipeline_mode = #tpu.pipeline_mode<synchronous>, transform_indices = @transform_10, window_bounds = array<i64: 1, 256>}, {pipeline_mode = #tpu.pipeline_mode<synchronous>, transform_indices = @transform_11, window_bounds = array<i64: 256, 8>}, {pipeline_mode = #tpu.pipeline_mode<synchronous>, transform_indices = @transform_12, window_bounds = array<i64: 1, 8>}, {transform_indices = @transform_13, window_bounds = array<i64: 128, 8>}]} {
    %c0 = arith.constant 0 : index
    %c0_0 = arith.constant 0 : index
    %0 = vector.load %arg1[%c0, %c0_0] : memref<128x32xf32, #tpu.memory_space<vmem>>, vector<128x32xf32>
    %1 = arith.truncf %0 : vector<128x32xf32> to vector<128x32xbf16>
    %c0_1 = arith.constant 0 : index
    %c0_2 = arith.constant 0 : index
    %2 = vector.load %arg2[%c0_1, %c0_2] : memref<32x256xbf16, #tpu.memory_space<vmem>>, vector<32x256xbf16>
    %cst = arith.constant dense<0.000000e+00> : vector<128x256xf32>
    %3 = tpu.matmul %1, %2, %cst {dimension_numbers = #tpu.dot_dimension_numbers<[1], [0], [0], [1], [0, 0, 1, 1], [], []>} : vector<128x32xbf16>, vector<32x256xbf16>, vector<128x256xf32> -> vector<128x256xf32>
    %c0_3 = arith.constant 0 : index
    %c0_4 = arith.constant 0 : index
    %4 = vector.load %arg3[%c0_3, %c0_4] : memref<1x256xf32, #tpu.memory_space<vmem>>, vector<1x256xf32>
    %5 = vector.broadcast %4 : vector<1x256xf32> to vector<128x256xf32>
    %6 = arith.addf %3, %5 : vector<128x256xf32>
    %cst_5 = arith.constant 0.000000e+00 : f32
    %7 = vector.broadcast %cst_5 : f32 to vector<128x256xf32>
    %8 = arith.maximumf %6, %7 : vector<128x256xf32>
    %9 = arith.truncf %8 : vector<128x256xf32> to vector<128x256xbf16>
    %c0_6 = arith.constant 0 : index
    %c0_7 = arith.constant 0 : index
    %10 = vector.load %arg4[%c0_6, %c0_7] : memref<256x256xbf16, #tpu.memory_space<vmem>>, vector<256x256xbf16>
    %cst_8 = arith.constant dense<0.000000e+00> : vector<128x256xf32>
    %11 = tpu.matmul %9, %10, %cst_8 {dimension_numbers = #tpu.dot_dimension_numbers<[1], [0], [0], [1], [0, 0, 1, 1], [], []>} : vector<128x256xbf16>, vector<256x256xbf16>, vector<128x256xf32> -> vector<128x256xf32>
    %c0_9 = arith.constant 0 : index
    %c0_10 = arith.constant 0 : index
    %12 = vector.load %arg5[%c0_9, %c0_10] : memref<1x256xf32, #tpu.memory_space<vmem>>, vector<1x256xf32>
    %13 = vector.broadcast %12 : vector<1x256xf32> to vector<128x256xf32>
    %14 = arith.addf %11, %13 : vector<128x256xf32>
    %cst_11 = arith.constant 0.000000e+00 : f32
    %15 = vector.broadcast %cst_11 : f32 to vector<128x256xf32>
    %16 = arith.maximumf %14, %15 : vector<128x256xf32>
    %17 = arith.truncf %16 : vector<128x256xf32> to vector<128x256xbf16>
    %c0_12 = arith.constant 0 : index
    %c0_13 = arith.constant 0 : index
    %18 = vector.load %arg6[%c0_12, %c0_13] : memref<256x256xbf16, #tpu.memory_space<vmem>>, vector<256x256xbf16>
    %cst_14 = arith.constant dense<0.000000e+00> : vector<128x256xf32>
    %19 = tpu.matmul %17, %18, %cst_14 {dimension_numbers = #tpu.dot_dimension_numbers<[1], [0], [0], [1], [0, 0, 1, 1], [], []>} : vector<128x256xbf16>, vector<256x256xbf16>, vector<128x256xf32> -> vector<128x256xf32>
    %c0_15 = arith.constant 0 : index
    %c0_16 = arith.constant 0 : index
    %20 = vector.load %arg7[%c0_15, %c0_16] : memref<1x256xf32, #tpu.memory_space<vmem>>, vector<1x256xf32>
    %21 = vector.broadcast %20 : vector<1x256xf32> to vector<128x256xf32>
    %22 = arith.addf %19, %21 : vector<128x256xf32>
    %cst_17 = arith.constant 0.000000e+00 : f32
    %23 = vector.broadcast %cst_17 : f32 to vector<128x256xf32>
    %24 = arith.maximumf %22, %23 : vector<128x256xf32>
    %25 = arith.truncf %24 : vector<128x256xf32> to vector<128x256xbf16>
    %c0_18 = arith.constant 0 : index
    %c0_19 = arith.constant 0 : index
    %26 = vector.load %arg8[%c0_18, %c0_19] : memref<256x256xbf16, #tpu.memory_space<vmem>>, vector<256x256xbf16>
    %cst_20 = arith.constant dense<0.000000e+00> : vector<128x256xf32>
    %27 = tpu.matmul %25, %26, %cst_20 {dimension_numbers = #tpu.dot_dimension_numbers<[1], [0], [0], [1], [0, 0, 1, 1], [], []>} : vector<128x256xbf16>, vector<256x256xbf16>, vector<128x256xf32> -> vector<128x256xf32>
    %c0_21 = arith.constant 0 : index
    %c0_22 = arith.constant 0 : index
    %28 = vector.load %arg9[%c0_21, %c0_22] : memref<1x256xf32, #tpu.memory_space<vmem>>, vector<1x256xf32>
    %29 = vector.broadcast %28 : vector<1x256xf32> to vector<128x256xf32>
    %30 = arith.addf %27, %29 : vector<128x256xf32>
    %cst_23 = arith.constant 0.000000e+00 : f32
    %31 = vector.broadcast %cst_23 : f32 to vector<128x256xf32>
    %32 = arith.maximumf %30, %31 : vector<128x256xf32>
    %33 = arith.truncf %32 : vector<128x256xf32> to vector<128x256xbf16>
    %c0_24 = arith.constant 0 : index
    %c0_25 = arith.constant 0 : index
    %34 = vector.load %arg10[%c0_24, %c0_25] : memref<256x256xbf16, #tpu.memory_space<vmem>>, vector<256x256xbf16>
    %cst_26 = arith.constant dense<0.000000e+00> : vector<128x256xf32>
    %35 = tpu.matmul %33, %34, %cst_26 {dimension_numbers = #tpu.dot_dimension_numbers<[1], [0], [0], [1], [0, 0, 1, 1], [], []>} : vector<128x256xbf16>, vector<256x256xbf16>, vector<128x256xf32> -> vector<128x256xf32>
    %c0_27 = arith.constant 0 : index
    %c0_28 = arith.constant 0 : index
    %36 = vector.load %arg11[%c0_27, %c0_28] : memref<1x256xf32, #tpu.memory_space<vmem>>, vector<1x256xf32>
    %37 = vector.broadcast %36 : vector<1x256xf32> to vector<128x256xf32>
    %38 = arith.addf %35, %37 : vector<128x256xf32>
    %cst_29 = arith.constant 0.000000e+00 : f32
    %39 = vector.broadcast %cst_29 : f32 to vector<128x256xf32>
    %40 = arith.maximumf %38, %39 : vector<128x256xf32>
    %41 = arith.truncf %40 : vector<128x256xf32> to vector<128x256xbf16>
    %c0_30 = arith.constant 0 : index
    %c0_31 = arith.constant 0 : index
    %42 = vector.load %arg12[%c0_30, %c0_31] : memref<256x8xbf16, #tpu.memory_space<vmem>>, vector<256x8xbf16>
    %cst_32 = arith.constant dense<0.000000e+00> : vector<128x8xf32>
    %43 = tpu.matmul %41, %42, %cst_32 {dimension_numbers = #tpu.dot_dimension_numbers<[1], [0], [0], [1], [0, 0, 1, 1], [], []>} : vector<128x256xbf16>, vector<256x8xbf16>, vector<128x8xf32> -> vector<128x8xf32>
    %c0_33 = arith.constant 0 : index
    %c0_34 = arith.constant 0 : index
    %44 = vector.load %arg13[%c0_33, %c0_34] : memref<1x8xf32, #tpu.memory_space<vmem>>, vector<1x8xf32>
    %45 = vector.broadcast %44 : vector<1x8xf32> to vector<128x8xf32>
    %46 = arith.addf %43, %45 : vector<128x8xf32>
    %c0_35 = arith.constant 0 : index
    %c0_36 = arith.constant 0 : index
    %47 = vector.load %arg14[%c0_35, %c0_36] : memref<128x8xf32, #tpu.memory_space<vmem>>, vector<128x8xf32>
    tpu.vector_store %arg14[%c0_35, %c0_36], %46 {strides = array<i32>} : memref<128x8xf32, #tpu.memory_space<vmem>>, vector<128x8xf32>,
    return
  }
  func.func @transform_0(%arg0: i32) -> (i32, i32) {
    %c0_i32 = arith.constant 0 : i32
    %c0_i32_0 = arith.constant 0 : i32
    return %arg0, %c0_i32 : i32, i32
  }
  func.func @transform_1(%arg0: i32) -> (i32, i32) {
    %c0_i32 = arith.constant 0 : i32
    %c0_i32_0 = arith.constant 0 : i32
    %c0_i32_1 = arith.constant 0 : i32
    return %c0_i32, %c0_i32_0 : i32, i32
  }
  func.func @transform_2(%arg0: i32) -> (i32, i32) {
    %c0_i32 = arith.constant 0 : i32
    %c0_i32_0 = arith.constant 0 : i32
    %c0_i32_1 = arith.constant 0 : i32
    return %c0_i32, %c0_i32_0 : i32, i32
  }
  func.func @transform_3(%arg0: i32) -> (i32, i32) {
    %c0_i32 = arith.constant 0 : i32
    %c0_i32_0 = arith.constant 0 : i32
    %c0_i32_1 = arith.constant 0 : i32
    return %c0_i32, %c0_i32_0 : i32, i32
  }
  func.func @transform_4(%arg0: i32) -> (i32, i32) {
    %c0_i32 = arith.constant 0 : i32
    %c0_i32_0 = arith.constant 0 : i32
    %c0_i32_1 = arith.constant 0 : i32
    return %c0_i32, %c0_i32_0 : i32, i32
  }
  func.func @transform_5(%arg0: i32) -> (i32, i32) {
    %c0_i32 = arith.constant 0 : i32
    %c0_i32_0 = arith.constant 0 : i32
    %c0_i32_1 = arith.constant 0 : i32
    return %c0_i32, %c0_i32_0 : i32, i32
  }
  func.func @transform_6(%arg0: i32) -> (i32, i32) {
    %c0_i32 = arith.constant 0 : i32
    %c0_i32_0 = arith.constant 0 : i32
    %c0_i32_1 = arith.constant 0 : i32
    return %c0_i32, %c0_i32_0 : i32, i32
  }
  func.func @transform_7(%arg0: i32) -> (i32, i32) {
    %c0_i32 = arith.constant 0 : i32
    %c0_i32_0 = arith.constant 0 : i32
    %c0_i32_1 = arith.constant 0 : i32
    return %c0_i32, %c0_i32_0 : i32, i32
  }
  func.func @transform_8(%arg0: i32) -> (i32, i32) {
    %c0_i32 = arith.constant 0 : i32
    %c0_i32_0 = arith.constant 0 : i32
    %c0_i32_1 = arith.constant 0 : i32
    return %c0_i32, %c0_i32_0 : i32, i32
  }
  func.func @transform_9(%arg0: i32) -> (i32, i32) {
    %c0_i32 = arith.constant 0 : i32
    %c0_i32_0 = arith.constant 0 : i32
    %c0_i32_1 = arith.constant 0 : i32
    return %c0_i32, %c0_i32_0 : i32, i32
  }
  func.func @transform_10(%arg0: i32) -> (i32, i32) {
    %c0_i32 = arith.constant 0 : i32
    %c0_i32_0 = arith.constant 0 : i32
    %c0_i32_1 = arith.constant 0 : i32
    return %c0_i32, %c0_i32_0 : i32, i32
  }
  func.func @transform_11(%arg0: i32) -> (i32, i32) {
    %c0_i32 = arith.constant 0 : i32
    %c0_i32_0 = arith.constant 0 : i32
    %c0_i32_1 = arith.constant 0 : i32
    return %c0_i32, %c0_i32_0 : i32, i32
  }
  func.func @transform_12(%arg0: i32) -> (i32, i32) {
    %c0_i32 = arith.constant 0 : i32
    %c0_i32_0 = arith.constant 0 : i32
    %c0_i32_1 = arith.constant 0 : i32
    return %c0_i32, %c0_i32_0 : i32, i32
  }
  func.func @transform_13(%arg0: i32) -> (i32, i32) {
    %c0_i32 = arith.constant 0 : i32
    %c0_i32_0 = arith.constant 0 : i32
    return %arg0, %c0_i32 : i32, i32
  }
}

</mosaic_0001>

<bundles_post_ra>
// kernel: tpu_custom_call.1
= control target key start
LH: loop header
LB: loop body
LE: loop exit
PB: predicated region body
PF: predicated region fallthrough
CT: control target
= control target key end

     0   :  { %18 = vsyncpa [#allocation3], 0  ;;  %s3232_s0 = inlined_call_operand.vmem [shape: f32[128,32], index: 0, kind: input, shape index: {}]   ;;  %s3233_s1 = inlined_call_operand.vmem [shape: bf16[32,256], index: 1, kind: input, shape index: {}]   ;;  %s3234_s2 = inlined_call_operand.vmem [shape: f32[1,256], index: 2, kind: input, shape index: {}]   ;;  %s3235_s3 = inlined_call_operand.vmem [shape: bf16[256,256], index: 3, kind: input, shape index: {}]   ;;  %s3236_s4 = inlined_call_operand.vmem [shape: f32[1,256], index: 4, kind: input, shape index: {}]   ;;  %s3237_s5 = inlined_call_operand.hbm [shape: bf16[256,256], index: 5, kind: input, shape index: {}]   ;;  %s3238_s6 = inlined_call_operand.vmem [shape: f32[1,256], index: 6, kind: input, shape index: {}]   ;;  %s3239_s7 = inlined_call_operand.hbm [shape: bf16[256,256], index: 7, kind: input, shape index: {}]   ;;  %s3240_s8 = inlined_call_operand.vmem [shape: f32[1,256], index: 8, kind: input, shape index: {}]   ;;  %s3241_s9 = inlined_call_operand.hbm [shape: bf16[256,256], index: 9, kind: input, shape index: {}]   ;;  %s3242_s10 = inlined_call_operand.vmem [shape: f32[1,256], index: 10, kind: input, shape index: {}]   ;;  %s3243_s11 = inlined_call_operand.vmem [shape: bf16[256,8], index: 11, kind: input, shape index: {}]   ;;  %s3244_s12 = inlined_call_operand.vmem [shape: f32[1,8], index: 12, kind: input, shape index: {}]   ;;  %s3245_s13 = inlined_call_operand.vmem [shape: f32[128,8], index: 13, kind: output, shape index: {}]  }
   0x1   :  { %19 = vsyncpa [#allocation5], 0  ;;  %s2574_s25 = smov [#allocation4]   ;;  %s2575_s27 = smov [#allocation2]  }
   0x2   :  { %s49_s26 = sshll.u32 %s2574_s25, 4  ;;  %s35_s28 = sshll.u32 %s2575_s27, 4  ;;  %s50_s26 = int_to_ptr.vmem [resolvable:$true] %s49_s26  ;;  %s2650_s28 = int_to_ptr.vmem [resolvable:$true] %s35_s28 }
   0x3   :  { %s2504_s14 = scalar_lea.hbm %s3239_s7, 4096 }
   0x4   :  { %p2505_p0 = scmp.ne.s32.totalorder %s3239_s7, %s2504_s14  ;;  %p2508_p1 = scmp.lt.u32.totalorder %s2504_s14, %s3239_s7 }
   0x6   :  { %p2510_p2 = pnand %p2508_p1, %p2505_p0 }
   0x8   :  { %2513 = shalt.err (!%p2510_p2)
}
   0x9   :  { %s2514_s19 = scalar_lea.vmem %s50_s26, 4096  ;;  %p2519_p4 = scmp.lt.s32.totalorder %s50_s26, %s50_s26 }
   0xa   :  { %p2515_p3 = scmp.ne.s32.totalorder %s50_s26, %s2514_s19  ;;  %p2520_p5 = scmp.lt.s32.totalorder %s2514_s19, %s2514_s19 }
   0xc   :  { %p2521_p6 = por %p2520_p5, %p2519_p4 }
   0xe   :  { %p2522_p7 = pnand %p2521_p6, %p2515_p3 }
  0x10   :  { %2525 = shalt.err (!%p2522_p7)
}
  0x11   :  { %s2576_s20 = smov 128   ;;  %s2577_s21 = smov 8  }
  0x12   :  { %55 = dma.hbm_to_vmem [thread:$0]  %s3239_s7, 4096, %s50_s26, [#allocation5], %s2576_s20, %s2576_s20, %s2577_s21  }
  0x13   :  { %s2526_s27 = scalar_lea.hbm %s3237_s5, 4096 }
  0x14   :  { %p2527_p8 = scmp.ne.s32.totalorder %s3237_s5, %s2526_s27  ;;  %p2530_p9 = scmp.lt.u32.totalorder %s2526_s27, %s3237_s5 }
  0x16   :  { %p2532_p10 = pnand %p2530_p9, %p2527_p8 }
  0x18   :  { %2535 = shalt.err (!%p2532_p10)
}
  0x19   :  { %s2536_s16 = scalar_lea.vmem %s2650_s28, 4096  ;;  %p2541_p12 = scmp.lt.s32.totalorder %s2650_s28, %s2650_s28 }
  0x1a   :  { %p2537_p11 = scmp.ne.s32.totalorder %s2650_s28, %s2536_s16  ;;  %p2542_p13 = scmp.lt.s32.totalorder %s2536_s16, %s2536_s16 }
  0x1c   :  { %p2543_p0 = por %p2542_p13, %p2541_p12 }
  0x1e   :  { %p2544_p1 = pnand %p2543_p0, %p2537_p11 }
  0x20   :  { %2547 = shalt.err (!%p2544_p1)
}
  0x21   :  { %41 = dma.hbm_to_vmem [thread:$0]  %s3237_s5, 4096, %s2650_s28, [#allocation3], %s2576_s20, %s2576_s20, %s2577_s21  }
  0x22   :  { %s2578_s17 = smov [#allocation6]   ;;  %s2548_s23 = scalar_lea.hbm %s3241_s9, 4096 }
  0x23   :  { %s63_s18 = sshll.u32 %s2578_s17, 4  ;;  %p2549_p2 = scmp.ne.s32.totalorder %s3241_s9, %s2548_s23  ;;  %s64_s18 = int_to_ptr.vmem [resolvable:$true] %s63_s18 }
  0x24   :  { %p2552_p3 = scmp.lt.u32.totalorder %s2548_s23, %s3241_s9 }
  0x26   :  { %p2554_p4 = pnand %p2552_p3, %p2549_p2 }
  0x28   :  { %2557 = shalt.err (!%p2554_p4)
}
  0x29   :  { %s2558_s30 = scalar_lea.vmem %s64_s18, 4096  ;;  %p2563_p6 = scmp.lt.s32.totalorder %s64_s18, %s64_s18 }
  0x2a   :  { %p2559_p5 = scmp.ne.s32.totalorder %s64_s18, %s2558_s30  ;;  %p2564_p7 = scmp.lt.s32.totalorder %s2558_s30, %s2558_s30 }
  0x2c   :  { %p2565_p8 = por %p2564_p7, %p2563_p6 }
  0x2e   :  { %p2566_p9 = pnand %p2565_p8, %p2559_p5 }
  0x30   :  { %2569 = shalt.err (!%p2566_p9)
}
  0x31   :  { %69 = dma.hbm_to_vmem [thread:$0]  %s3241_s9, 4096, %s64_s18, [#allocation5], %s2576_s20, %s2576_s20, %s2577_s21  }
  0x32   :  { %2570 = dma.done.wait [#allocation3], 4096  }
  0x33   :  { %2571 = vsyncadd [#allocation3], 4294963200 }
  0x34   :  { %2572 = dma.done.wait [#allocation5], 8192  }
  0x35   :  { %2573 = vsyncadd [#allocation5], 4294959104  ;;  %v2579_v0 = vmov 0   ;;  %v2290_v1 = vld [vmem:[%s3233_s1 + $0x4] ss:$8 sps:$4 sm:$0xff]   ;;  %vm146_vm0 = vcmask 261120  }
  0x36   :  { %203 = vmatprep.mubr.bf16.mxu0 %v2579_v0  ;;  %v2292_v2 = vld [vmem:[%s3233_s1] ss:$8 sps:$4 sm:$0xff]   ;;  %171 = vmatprep.subr.bf16.mxu0 %v2290_v1  ;;  %v2293_v3 = vld [vmem:[%s3233_s1 + $0x14] ss:$8 sps:$4 sm:$0xff]   ;;  %v2295_v4 = vld [vmem:[%s3233_s1 + $0x10] ss:$8 sps:$4 sm:$0xff]  }
  0x37   :  { %172 = vmatpush1.bf16.msra.mxu0 %v2292_v2  ;;  %v86_v5 = vld [vmem:[%s3232_s0] sm:$0xff]  ;;  %v87_v6 = vld [vmem:[%s3232_s0 + $0x8] sm:$0xff]  ;;  %v88_v10 = vld [vmem:[%s3232_s0 + $0x10] sm:$0xff]  ;;  %vm2024_vm1 = vcmask 64512  }
  0x38   :  { %173 = vmatprep.subr.bf16.mxu0 %v2293_v3  ;;  %v102_v7 = vpack.c.bf16 %v87_v6, %v86_v5  ;;  %v2296_v8 = vld [vmem:[%s3235_s3 + $0x4] ss:$8 sps:$4 sm:$0xff]   ;;  %v2298_v9 = vld [vmem:[%s3235_s3] ss:$8 sps:$4 sm:$0xff]   ;;  %v2299_v11 = vld [vmem:[%s3235_s3 + $0x14] ss:$8 sps:$4 sm:$0xff]  }
  0x39   :  { %536 = vmatprep.subr.bf16.mxu1 %v2296_v8  ;;  %v89_v12 = vld [vmem:[%s3232_s0 + $0x18] sm:$0xff]  ;;  %v2302_v14 = vld [vmem:[%s3235_s3 + $0x24] ss:$8 sps:$4 sm:$0xff]   ;;  %v2304_v16 = vld [vmem:[%s3235_s3 + $0x20] ss:$8 sps:$4 sm:$0xff]  }
  0x3a   :  { %537 = vmatpush1.bf16.msra.mxu1 %v2298_v9  ;;  %v2301_v13 = vld [vmem:[%s3235_s3 + $0x10] ss:$8 sps:$4 sm:$0xff]   ;;  %v103_v15 = vpack.c.bf16 %v89_v12, %v88_v10  ;;  %v2305_v17 = vld [vmem:[%s3235_s3 + $0x34] ss:$8 sps:$4 sm:$0xff]   ;;  %v90_v18 = vld [vmem:[%s3232_s0 + $0x20] sm:$0xff] }
  0x3b   :  { %174 = vmatpush1.bf16.msra.mxu0 %v2295_v4  ;;  %538 = vmatprep.subr.bf16.mxu1 %v2299_v11  ;;  %v91_v19 = vld [vmem:[%s3232_s0 + $0x28] sm:$0xff]  ;;  %v2307_v20 = vld [vmem:[%s3235_s3 + $0x30] ss:$8 sps:$4 sm:$0xff]   ;;  %v2311_v24 = vld [vmem:[%s3235_s3 + $0x54] ss:$8 sps:$4 sm:$0xff]  }
  0x3c   :  { %v2308_v21 = vld [vmem:[%s3235_s3 + $0x44] ss:$8 sps:$4 sm:$0xff]   ;;  %v104_v22 = vpack.c.bf16 %v91_v19, %v90_v18  ;;  %v2310_v23 = vld [vmem:[%s3235_s3 + $0x40] ss:$8 sps:$4 sm:$0xff]   ;;  %v92_v25 = vld [vmem:[%s3232_s0 + $0x30] sm:$0xff] }
  0x3d   :  { %v93_v26 = vld [vmem:[%s3232_s0 + $0x38] sm:$0xff]  ;;  %v2314_v28 = vld [vmem:[%s3235_s3 + $0x64] ss:$8 sps:$4 sm:$0xff]   ;;  %v2316_v29 = vld [vmem:[%s3235_s3 + $0x60] ss:$8 sps:$4 sm:$0xff]  }
  0x3e   :  { %2051 = vmatmul.mubr.msk.bf16.vlgmr.msra.gmra.mrb[0].mxu0 %vm146_vm0, %v102_v7  ;;  %539 = vmatpush1.bf16.msra.mxu1 %v2301_v13  ;;  %v2313_v27 = vld [vmem:[%s3235_s3 + $0x50] ss:$8 sps:$4 sm:$0xff]   ;;  %v105_v30 = vpack.c.bf16 %v93_v26, %v92_v25  ;;  %v2317_v31 = vld [vmem:[%s3235_s3 + $0x74] ss:$8 sps:$4 sm:$0xff]   ;;  %v94_v32 = vld [vmem:[%s3232_s0 + $0x40] sm:$0xff] }
  0x3f   :  { %213 = vmatprep.mubr.bf16.mxu0 %v2579_v0  ;;  %540 = vmatprep.subr.bf16.mxu1 %v2302_v14  ;;  %v95_v33 = vld [vmem:[%s3232_s0 + $0x48] sm:$0xff]  ;;  %v2319_v34 = vld [vmem:[%s3235_s3 + $0x70] ss:$8 sps:$4 sm:$0xff]   ;;  %v2323_v38 = vld [vmem:[%s3235_s3 + $0x94] ss:$8 sps:$4 sm:$0xff]  }
  0x40   :  { %v2320_v35 = vld [vmem:[%s3235_s3 + $0x84] ss:$8 sps:$4 sm:$0xff]   ;;  %v2322_v36 = vld [vmem:[%s3235_s3 + $0x80] ss:$8 sps:$4 sm:$0xff]   ;;  %v106_v37 = vpack.c.bf16 %v95_v33, %v94_v32  ;;  %v96_v39 = vld [vmem:[%s3232_s0 + $0x50] sm:$0xff] }
  0x41   :  { %v97_v40 = vld [vmem:[%s3232_s0 + $0x58] sm:$0xff]  ;;  %v2326_v42 = vld [vmem:[%s3235_s3 + $0xa4] ss:$8 sps:$4 sm:$0xff]   ;;  %v2328_v43 = vld [vmem:[%s3235_s3 + $0xa0] ss:$8 sps:$4 sm:$0xff]  }
  0x42   :  { %541 = vmatpush1.bf16.msra.mxu1 %v2304_v16  ;;  %v2325_v41 = vld [vmem:[%s3235_s3 + $0x90] ss:$8 sps:$4 sm:$0xff]   ;;  %v107_v44 = vpack.c.bf16 %v97_v40, %v96_v39  ;;  %v2329_v45 = vld [vmem:[%s3235_s3 + $0xb4] ss:$8 sps:$4 sm:$0xff]   ;;  %v98_v46 = vld [vmem:[%s3232_s0 + $0x60] sm:$0xff] }
  0x43   :  { %542 = vmatprep.subr.bf16.mxu1 %v2305_v17  ;;  %v99_v47 = vld [vmem:[%s3232_s0 + $0x68] sm:$0xff]  ;;  %v2331_v48 = vld [vmem:[%s3235_s3 + $0xb0] ss:$8 sps:$4 sm:$0xff]   ;;  %v2335_v52 = vld [vmem:[%s3235_s3 + $0xd4] ss:$8 sps:$4 sm:$0xff]  }
  0x44   :  { %v2332_v49 = vld [vmem:[%s3235_s3 + $0xc4] ss:$8 sps:$4 sm:$0xff]   ;;  %v2334_v50 = vld [vmem:[%s3235_s3 + $0xc0] ss:$8 sps:$4 sm:$0xff]   ;;  %v108_v51 = vpack.c.bf16 %v99_v47, %v98_v46  ;;  %v100_v53 = vld [vmem:[%s3232_s0 + $0x70] sm:$0xff] }
  0x45   :  { %v101_v54 = vld [vmem:[%s3232_s0 + $0x78] sm:$0xff]  ;;  %v2338_v57 = vld [vmem:[%s3235_s3 + $0xe4] ss:$8 sps:$4 sm:$0xff]   ;;  %v2340_v58 = vld [vmem:[%s3235_s3 + $0xe0] ss:$8 sps:$4 sm:$0xff]  }
  0x46   :  { %2052 = vmatmul.mubr.msk.bf16.gmra.mrb[4].mxu0 %vm146_vm0, %v103_v15  ;;  %543 = vmatpush1.bf16.msra.mxu1 %v2307_v20  ;;  %v109_v55 = vpack.c.bf16 %v101_v54, %v100_v53  ;;  %v2337_v56 = vld [vmem:[%s3235_s3 + $0xd0] ss:$8 sps:$4 sm:$0xff]   ;;  %v2341_v59 = vld [vmem:[%s3235_s3 + $0xf4] ss:$8 sps:$4 sm:$0xff]   ;;  %v2344_v61 = vld [vmem:[#allocation2] ss:$8 sps:$4 sm:$0xff]  }
  0x47   :  { %223 = vmatprep.mubr.bf16.mxu0 %v2579_v0  ;;  %544 = vmatprep.subr.bf16.mxu1 %v2308_v21  ;;  %v2343_v60 = vld [vmem:[%s3235_s3 + $0xf0] ss:$8 sps:$4 sm:$0xff]   ;;  %v2346_v62 = vld [vmem:[#allocation2 + $0x4] ss:$8 sps:$4 sm:$0xff]   ;;  %v2349_v63 = vld [vmem:[#allocation2 + $0x14] ss:$8 sps:$4 sm:$0xff]  }
  0x48   :  { %901 = vmatprep.subr.bf16.mxu0 %v2346_v62  ;;  %v2352_v1 = vld [vmem:[#allocation2 + $0x24] ss:$8 sps:$4 sm:$0xff]   ;;  %v2350_v2 = vld [vmem:[#allocation2 + $0x20] ss:$8 sps:$4 sm:$0xff]   ;;  %v2355_v3 = vld [vmem:[#allocation2 + $0x34] ss:$8 sps:$4 sm:$0xff]  }
  0x49   :  { %902 = vmatpush1.bf16.msra.mxu0 %v2344_v61  ;;  %v2353_v4 = vld [vmem:[#allocation2 + $0x30] ss:$8 sps:$4 sm:$0xff]   ;;  %v2358_v5 = vld [vmem:[#allocation2 + $0x44] ss:$8 sps:$4 sm:$0xff]   ;;  %v2356_v6 = vld [vmem:[#allocation2 + $0x40] ss:$8 sps:$4 sm:$0xff]  }
  0x4a   :  { %545 = vmatpush1.bf16.msra.mxu1 %v2310_v23  ;;  %903 = vmatprep.subr.bf16.mxu0 %v2349_v63  ;;  %v2361_v7 = vld [vmem:[#allocation2 + $0x54] ss:$8 sps:$4 sm:$0xff]   ;;  %v2359_v8 = vld [vmem:[#allocation2 + $0x50] ss:$8 sps:$4 sm:$0xff]   ;;  %v2364_v9 = vld [vmem:[#allocation2 + $0x64] ss:$8 sps:$4 sm:$0xff]  }
  0x4b   :  { %546 = vmatprep.subr.bf16.mxu1 %v2311_v24  ;;  %v2362_v10 = vld [vmem:[#allocation2 + $0x60] ss:$8 sps:$4 sm:$0xff]   ;;  %v2367_v11 = vld [vmem:[#allocation2 + $0x74] ss:$8 sps:$4 sm:$0xff]   ;;  %v2365_v12 = vld [vmem:[#allocation2 + $0x70] ss:$8 sps:$4 sm:$0xff]  }
  0x4c   :  { %v2370_v13 = vld [vmem:[#allocation2 + $0x84] ss:$8 sps:$4 sm:$0xff]   ;;  %v2368_v14 = vld [vmem:[#allocation2 + $0x80] ss:$8 sps:$4 sm:$0xff]   ;;  %v2373_v15 = vld [vmem:[#allocation2 + $0x94] ss:$8 sps:$4 sm:$0xff]  }
  0x4d   :  { %v2371_v16 = vld [vmem:[#allocation2 + $0x90] ss:$8 sps:$4 sm:$0xff]   ;;  %v2376_v17 = vld [vmem:[#allocation2 + $0xa4] ss:$8 sps:$4 sm:$0xff]   ;;  %v2374_v18 = vld [vmem:[#allocation2 + $0xa0] ss:$8 sps:$4 sm:$0xff]  }
  0x4e   :  { %2053 = vmatmul.mubr.msk.bf16.gmra.mrb[8].mxu0 %vm146_vm0, %v104_v22  ;;  %547 = vmatpush1.bf16.msra.mxu1 %v2313_v27  ;;  %v2379_v19 = vld [vmem:[#allocation2 + $0xb4] ss:$8 sps:$4 sm:$0xff]   ;;  %v2377_v20 = vld [vmem:[#allocation2 + $0xb0] ss:$8 sps:$4 sm:$0xff]   ;;  %v2382_v21 = vld [vmem:[#allocation2 + $0xc4] ss:$8 sps:$4 sm:$0xff]   ;;  %v116_v22 = vlaneseq }
  0x4f   :  { %233 = vmatprep.mubr.bf16.mxu0 %v2579_v0  ;;  %548 = vmatprep.subr.bf16.mxu1 %v2314_v28  ;;  %v2380_v23 = vld [vmem:[#allocation2 + $0xc0] ss:$8 sps:$4 sm:$0xff]   ;;  %v2385_v24 = vld [vmem:[#allocation2 + $0xd4] ss:$8 sps:$4 sm:$0xff]   ;;  %v2383_v26 = vld [vmem:[#allocation2 + $0xd0] ss:$8 sps:$4 sm:$0xff]  }
  0x50   :  { %v117_v25 = vshrl.u32 %v116_v22, 7  ;;  %v114_v28 = vld [vmem:[%s3234_s2] sm:$0x3] }
  0x52   :  { %549 = vmatpush1.bf16.msra.mxu1 %v2316_v29  ;;  %v2874_v27 = vsub.s32 0, %v117_v25  ;;  %v2879_v29 = vsub.s32 1, %v117_v25 }
  0x53   :  { %550 = vmatprep.subr.bf16.mxu1 %v2317_v31 }
  0x54   :  { %v2885_v31 = vrot.slane %v114_v28, %v2879_v29 }
  0x56   :  { %2054 = vmatmul.mubr.msk.bf16.gmra.mrb[12].mxu0 %vm146_vm0, %v105_v30  ;;  %551 = vmatpush1.bf16.msra.mxu1 %v2319_v34  ;;  %v2882_v30 = vrot.slane %v114_v28, %v2874_v27 }
  0x57   :  { %243 = vmatprep.mubr.bf16.mxu0 %v2579_v0  ;;  %552 = vmatprep.subr.bf16.mxu1 %v2320_v35 }
  0x5a   :  { %553 = vmatpush1.bf16.msra.mxu1 %v2322_v36 }
  0x5b   :  { %554 = vmatprep.subr.bf16.mxu1 %v2323_v38 }
  0x5e   :  { %2055 = vmatmul.mubr.msk.bf16.gmra.mrb[16].mxu0 %vm146_vm0, %v106_v37  ;;  %555 = vmatpush1.bf16.msra.mxu1 %v2325_v41 }
  0x5f   :  { %253 = vmatprep.mubr.bf16.mxu0 %v2579_v0  ;;  %556 = vmatprep.subr.bf16.mxu1 %v2326_v42 }
  0x62   :  { %557 = vmatpush1.bf16.msra.mxu1 %v2328_v43 }
  0x63   :  { %558 = vmatprep.subr.bf16.mxu1 %v2329_v45 }
  0x66   :  { %2056 = vmatmul.mubr.msk.bf16.gmra.mrb[20].mxu0 %vm146_vm0, %v107_v44  ;;  %559 = vmatpush1.bf16.msra.mxu1 %v2331_v48 }
  0x67   :  { %263 = vmatprep.mubr.bf16.mxu0 %v2579_v0  ;;  %560 = vmatprep.subr.bf16.mxu1 %v2332_v49 }
  0x6a   :  { %561 = vmatpush1.bf16.msra.mxu1 %v2334_v50 }
  0x6b   :  { %562 = vmatprep.subr.bf16.mxu1 %v2335_v52 }
  0x6e   :  { %2057 = vmatmul.mubr.msk.bf16.gmra.mrb[24].mxu0 %vm146_vm0, %v108_v51  ;;  %563 = vmatpush1.bf16.msra.mxu1 %v2337_v56 }
  0x6f   :  { %273 = vmatprep.mubr.bf16.mxu0 %v2579_v0  ;;  %564 = vmatprep.subr.bf16.mxu1 %v2338_v57  ;;  %v2347_v0 = vld [vmem:[#allocation2 + $0x10] ss:$8 sps:$4 sm:$0xff]  }
  0x70   :  { %904 = vmatpush1.bf16.msra.mxu0 %v2347_v0 }
  0x71   :  { %905 = vmatprep.subr.bf16.mxu0 %v2352_v1 }
  0x72   :  { %565 = vmatpush1.bf16.msra.mxu1 %v2340_v58 }
  0x73   :  { %566 = vmatprep.subr.bf16.mxu1 %v2341_v59 }
  0x74   :  { %906 = vmatpush1.bf16.msra.mxu0 %v2350_v2 }
  0x75   :  { %907 = vmatprep.subr.bf16.mxu0 %v2355_v3 }
  0x76   :  { %2058 = vmatmul.mubr.msk.bf16.gmra.mrb[28].mxu0 %vm146_vm0, %v109_v55  ;;  %567 = vmatpush1.bf16.msra.mxu1 %v2343_v60 }
  0x78   :  { %908 = vmatpush1.bf16.msra.mxu0 %v2353_v4 }
  0x79   :  { %909 = vmatprep.subr.bf16.mxu0 %v2358_v5 }
  0x7c   :  { %910 = vmatpush1.bf16.msra.mxu0 %v2356_v6 }
  0x7d   :  { %911 = vmatprep.subr.bf16.mxu0 %v2361_v7 }
  0x80   :  { %912 = vmatpush1.bf16.msra.mxu0 %v2359_v8 }
  0x81   :  { %913 = vmatprep.subr.bf16.mxu0 %v2364_v9 }
  0x84   :  { %914 = vmatpush1.bf16.msra.mxu0 %v2362_v10 }
  0x85   :  { %915 = vmatprep.subr.bf16.mxu0 %v2367_v11 }
  0x88   :  { %916 = vmatpush1.bf16.msra.mxu0 %v2365_v12 }
  0x89   :  { %917 = vmatprep.subr.bf16.mxu0 %v2370_v13 }
  0x8c   :  { %918 = vmatpush1.bf16.msra.mxu0 %v2368_v14 }
  0x8d   :  { %919 = vmatprep.subr.bf16.mxu0 %v2373_v15 }
  0x90   :  { %920 = vmatpush1.bf16.msra.mxu0 %v2371_v16 }
  0x91   :  { %921 = vmatprep.subr.bf16.mxu0 %v2376_v17 }
  0x94   :  { %922 = vmatpush1.bf16.msra.mxu0 %v2374_v18 }
  0x95   :  { %923 = vmatprep.subr.bf16.mxu0 %v2379_v19 }
  0x98   :  { %924 = vmatpush1.bf16.msra.mxu0 %v2377_v20 }
  0x99   :  { %925 = vmatprep.subr.bf16.mxu0 %v2382_v21 }
  0x9c   :  { %926 = vmatpush1.bf16.msra.mxu0 %v2380_v23 }
  0x9d   :  { %927 = vmatprep.subr.bf16.mxu0 %v2385_v24 }
  0xa0   :  { %928 = vmatpush1.bf16.msra.mxu0 %v2383_v26 }
 0x111   :  { %v205_v32 = vpop.f32.mrb[0].mxu0 }
 0x112   :  { %v206_v33 = vadd.f32 %v205_v32, %v2882_v30  ;;  %v207_v34 = vpop.f32.mrb[1].mxu0 }
 0x113   :  { %v208_v35 = vadd.f32 %v207_v34, %v2885_v31  ;;  %v209_v36 = vpop.f32.mrb[2].mxu0 }
 0x114   :  { %v210_v37 = vadd.f32 %v209_v36, %v2882_v30  ;;  %v211_v38 = vpop.f32.mrb[3].mxu0  ;;  %v284_v40 = vmax.f32 %v206_v33, 0.0 }
 0x115   :  { %v212_v39 = vadd.f32 %v211_v38, %v2885_v31  ;;  %v285_v42 = vmax.f32 %v208_v35, 0.0 }
 0x116   :  { %v286_v41 = vmax.f32 %v210_v37, 0.0 }
 0x117   :  { %v287_v43 = vmax.f32 %v212_v39, 0.0 }
 0x118   :  { %v316_v44 = vpack.c.bf16 %v286_v41, %v284_v40 }
 0x119   :  { %v215_v45 = vpop.f32.mrb[4].mxu0  ;;  %v317_v46 = vpack.c.bf16 %v287_v43, %v285_v42 }
 0x11a   :  { %v216_v47 = vadd.f32 %v215_v45, %v2882_v30  ;;  %v217_v48 = vpop.f32.mrb[5].mxu0 }
 0x11b   :  { %v218_v49 = vadd.f32 %v217_v48, %v2885_v31  ;;  %v219_v50 = vpop.f32.mrb[6].mxu0  ;;  %568 = vmatprep.mubr.bf16.mxu1 %v317_v46 }
 0x11c   :  { %v220_v51 = vadd.f32 %v219_v50, %v2882_v30  ;;  %v221_v52 = vpop.f32.mrb[7].mxu0  ;;  %569 = vmatmul.mubr.bf16.vlgmr.msra.gmra.mrb[0].mxu1 %v316_v44  ;;  %v288_v54 = vmax.f32 %v216_v47, 0.0 }
 0x11d   :  { %v222_v53 = vadd.f32 %v221_v52, %v2885_v31  ;;  %v289_v56 = vmax.f32 %v218_v49, 0.0 }
 0x11e   :  { %v290_v55 = vmax.f32 %v220_v51, 0.0 }
 0x11f   :  { %v291_v57 = vmax.f32 %v222_v53, 0.0 }
 0x120   :  { %v318_v58 = vpack.c.bf16 %v290_v55, %v288_v54 }
 0x121   :  { %v319_v59 = vpack.c.bf16 %v291_v57, %v289_v56  ;;  %v225_v60 = vpop.f32.mrb[8].mxu0 }
 0x122   :  { %v226_v61 = vadd.f32 %v225_v60, %v2882_v30  ;;  %v227_v62 = vpop.f32.mrb[9].mxu0 }
 0x123   :  { %v228_v63 = vadd.f32 %v227_v62, %v2885_v31  ;;  %v229_v0 = vpop.f32.mrb[10].mxu0  ;;  %578 = vmatprep.mubr.bf16.mxu1 %v319_v59 }
 0x124   :  { %v230_v1 = vadd.f32 %v229_v0, %v2882_v30  ;;  %v231_v2 = vpop.f32.mrb[11].mxu0  ;;  %579 = vmatmul.mubr.bf16.gmra.mrb[4].mxu1 %v318_v58  ;;  %v292_v4 = vmax.f32 %v226_v61, 0.0 }
 0x125   :  { %v232_v3 = vadd.f32 %v231_v2, %v2885_v31  ;;  %v293_v6 = vmax.f32 %v228_v63, 0.0 }
 0x126   :  { %v294_v5 = vmax.f32 %v230_v1, 0.0 }
 0x127   :  { %v295_v7 = vmax.f32 %v232_v3, 0.0 }
 0x128   :  { %v320_v8 = vpack.c.bf16 %v294_v5, %v292_v4 }
 0x129   :  { %v321_v9 = vpack.c.bf16 %v295_v7, %v293_v6  ;;  %v235_v10 = vpop.f32.mrb[12].mxu0 }
 0x12a   :  { %v236_v11 = vadd.f32 %v235_v10, %v2882_v30  ;;  %v237_v12 = vpop.f32.mrb[13].mxu0 }
 0x12b   :  { %v238_v13 = vadd.f32 %v237_v12, %v2885_v31  ;;  %v239_v14 = vpop.f32.mrb[14].mxu0  ;;  %588 = vmatprep.mubr.bf16.mxu1 %v321_v9 }
 0x12c   :  { %v240_v15 = vadd.f32 %v239_v14, %v2882_v30  ;;  %v241_v16 = vpop.f32.mrb[15].mxu0  ;;  %589 = vmatmul.mubr.bf16.gmra.mrb[8].mxu1 %v320_v8  ;;  %v296_v18 = vmax.f32 %v236_v11, 0.0 }
 0x12d   :  { %v242_v17 = vadd.f32 %v241_v16, %v2885_v31  ;;  %v297_v20 = vmax.f32 %v238_v13, 0.0 }
 0x12e   :  { %v298_v19 = vmax.f32 %v240_v15, 0.0 }
 0x12f   :  { %v299_v21 = vmax.f32 %v242_v17, 0.0 }
 0x130   :  { %v322_v22 = vpack.c.bf16 %v298_v19, %v296_v18 }
 0x131   :  { %v323_v23 = vpack.c.bf16 %v299_v21, %v297_v20  ;;  %v245_v24 = vpop.f32.mrb[16].mxu0  ;;  %v2388_v20 = vld [vmem:[#allocation2 + $0xe4] ss:$8 sps:$4 sm:$0xff]   ;;  %v2386_v21 = vld [vmem:[#allocation2 + $0xe0] ss:$8 sps:$4 sm:$0xff]  }
 0x132   :  { %v246_v25 = vadd.f32 %v245_v24, %v2882_v30  ;;  %v247_v26 = vpop.f32.mrb[17].mxu0  ;;  %929 = vmatprep.subr.bf16.mxu0 %v2388_v20  ;;  %v2394_v24 = vld [vmem:[#allocation4 + $0x4] ss:$8 sps:$4 sm:$0xff]  }
 0x133   :  { %v248_v28 = vadd.f32 %v247_v26, %v2885_v31  ;;  %v249_v32 = vpop.f32.mrb[18].mxu0  ;;  %598 = vmatprep.mubr.bf16.mxu1 %v323_v23  ;;  %930 = vmatpush1.bf16.msra.mxu0 %v2386_v21  ;;  %v2389_v23 = vld [vmem:[#allocation2 + $0xf0] ss:$8 sps:$4 sm:$0xff]   ;;  %v2400_v26 = vld [vmem:[#allocation4 + $0x24] ss:$8 sps:$4 sm:$0xff]  }
 0x134   :  { %v250_v33 = vadd.f32 %v249_v32, %v2882_v30  ;;  %v251_v34 = vpop.f32.mrb[19].mxu0  ;;  %599 = vmatmul.mubr.bf16.gmra.mrb[12].mxu1 %v322_v22  ;;  %v300_v36 = vmax.f32 %v246_v25, 0.0  ;;  %v2391_v22 = vld [vmem:[#allocation2 + $0xf4] ss:$8 sps:$4 sm:$0xff]   ;;  %1266 = vmatprep.subr.bf16.mxu1 %v2394_v24 }
 0x135   :  { %v252_v35 = vadd.f32 %v251_v34, %v2885_v31  ;;  %v301_v38 = vmax.f32 %v248_v28, 0.0  ;;  %931 = vmatprep.subr.bf16.mxu0 %v2391_v22  ;;  %v2397_v25 = vld [vmem:[#allocation4 + $0x14] ss:$8 sps:$4 sm:$0xff]   ;;  %v2398_v28 = vld [vmem:[#allocation4 + $0x20] ss:$8 sps:$4 sm:$0xff]  }
 0x136   :  { %v302_v37 = vmax.f32 %v250_v33, 0.0  ;;  %v2403_v32 = vld [vmem:[#allocation4 + $0x34] ss:$8 sps:$4 sm:$0xff]   ;;  %v2401_v33 = vld [vmem:[#allocation4 + $0x30] ss:$8 sps:$4 sm:$0xff]  }
 0x137   :  { %v303_v39 = vmax.f32 %v252_v35, 0.0  ;;  %932 = vmatpush1.bf16.msra.mxu0 %v2389_v23  ;;  %v2406_v34 = vld [vmem:[#allocation4 + $0x44] ss:$8 sps:$4 sm:$0xff]   ;;  %v2404_v35 = vld [vmem:[#allocation4 + $0x40] ss:$8 sps:$4 sm:$0xff]  }
 0x138   :  { %v324_v40 = vpack.c.bf16 %v302_v37, %v300_v36  ;;  %v2409_v36 = vld [vmem:[#allocation4 + $0x54] ss:$8 sps:$4 sm:$0xff]   ;;  %v2407_v37 = vld [vmem:[#allocation4 + $0x50] ss:$8 sps:$4 sm:$0xff]  }
 0x139   :  { %v325_v41 = vpack.c.bf16 %v303_v39, %v301_v38  ;;  %v255_v42 = vpop.f32.mrb[20].mxu0  ;;  %v2412_v38 = vld [vmem:[#allocation4 + $0x64] ss:$8 sps:$4 sm:$0xff]   ;;  %v2410_v39 = vld [vmem:[#allocation4 + $0x60] ss:$8 sps:$4 sm:$0xff]  }
 0x13a   :  { %v256_v43 = vadd.f32 %v255_v42, %v2882_v30  ;;  %v257_v44 = vpop.f32.mrb[21].mxu0  ;;  %v2418_v42 = vld [vmem:[#allocation4 + $0x84] ss:$8 sps:$4 sm:$0xff]  }
 0x13b   :  { %v258_v45 = vadd.f32 %v257_v44, %v2885_v31  ;;  %v259_v46 = vpop.f32.mrb[22].mxu0  ;;  %608 = vmatprep.mubr.bf16.mxu1 %v325_v41  ;;  %v2413_v41 = vld [vmem:[#allocation4 + $0x70] ss:$8 sps:$4 sm:$0xff]   ;;  %v2421_v44 = vld [vmem:[#allocation4 + $0x94] ss:$8 sps:$4 sm:$0xff]  }
 0x13c   :  { %v260_v47 = vadd.f32 %v259_v46, %v2882_v30  ;;  %v261_v48 = vpop.f32.mrb[23].mxu0  ;;  %609 = vmatmul.mubr.bf16.gmra.mrb[16].mxu1 %v324_v40  ;;  %v304_v50 = vmax.f32 %v256_v43, 0.0  ;;  %v2415_v40 = vld [vmem:[#allocation4 + $0x74] ss:$8 sps:$4 sm:$0xff]   ;;  %v2416_v43 = vld [vmem:[#allocation4 + $0x80] ss:$8 sps:$4 sm:$0xff]  }
 0x13d   :  { %v262_v49 = vadd.f32 %v261_v48, %v2885_v31  ;;  %v305_v52 = vmax.f32 %v258_v45, 0.0  ;;  %v2419_v45 = vld [vmem:[#allocation4 + $0x90] ss:$8 sps:$4 sm:$0xff]   ;;  %v2424_v46 = vld [vmem:[#allocation4 + $0xa4] ss:$8 sps:$4 sm:$0xff]  }
 0x13e   :  { %v306_v51 = vmax.f32 %v260_v47, 0.0  ;;  %v2422_v47 = vld [vmem:[#allocation4 + $0xa0] ss:$8 sps:$4 sm:$0xff]   ;;  %v2427_v48 = vld [vmem:[#allocation4 + $0xb4] ss:$8 sps:$4 sm:$0xff]  }
 0x13f   :  { %v307_v53 = vmax.f32 %v262_v49, 0.0  ;;  %v2425_v49 = vld [vmem:[#allocation4 + $0xb0] ss:$8 sps:$4 sm:$0xff]  }
 0x140   :  { %v326_v54 = vpack.c.bf16 %v306_v51, %v304_v50  ;;  %v2430_v50 = vld [vmem:[#allocation4 + $0xc4] ss:$8 sps:$4 sm:$0xff]   ;;  %v2428_v51 = vld [vmem:[#allocation4 + $0xc0] ss:$8 sps:$4 sm:$0xff]  }
 0x141   :  { %v327_v55 = vpack.c.bf16 %v307_v53, %v305_v52  ;;  %v265_v56 = vpop.f32.mrb[24].mxu0  ;;  %v2433_v52 = vld [vmem:[#allocation4 + $0xd4] ss:$8 sps:$4 sm:$0xff]   ;;  %v2431_v53 = vld [vmem:[#allocation4 + $0xd0] ss:$8 sps:$4 sm:$0xff]  }
 0x142   :  { %v266_v57 = vadd.f32 %v265_v56, %v2882_v30  ;;  %v267_v58 = vpop.f32.mrb[25].mxu0 }
 0x143   :  { %v268_v59 = vadd.f32 %v267_v58, %v2885_v31  ;;  %v269_v60 = vpop.f32.mrb[26].mxu0  ;;  %618 = vmatprep.mubr.bf16.mxu1 %v327_v55 }
 0x144   :  { %v270_v61 = vadd.f32 %v269_v60, %v2882_v30  ;;  %v271_v62 = vpop.f32.mrb[27].mxu0  ;;  %619 = vmatmul.mubr.bf16.gmra.mrb[20].mxu1 %v326_v54  ;;  %v308_v0 = vmax.f32 %v266_v57, 0.0  ;;  %v364_v54 = vld [vmem:[%s3236_s4] sm:$0x3] }
 0x145   :  { %v272_v63 = vadd.f32 %v271_v62, %v2885_v31  ;;  %v309_v2 = vmax.f32 %v268_v59, 0.0  ;;  %v2923_v55 = vrot.slane %v364_v54, %v2874_v27  ;;  %v2926_v56 = vrot.slane %v364_v54, %v2879_v29 }
 0x146   :  { %v310_v1 = vmax.f32 %v270_v61, 0.0 }
 0x147   :  { %v311_v3 = vmax.f32 %v272_v63, 0.0 }
 0x148   :  { %v328_v4 = vpack.c.bf16 %v310_v1, %v308_v0 }
 0x149   :  { %v329_v5 = vpack.c.bf16 %v311_v3, %v309_v2  ;;  %v275_v6 = vpop.f32.mrb[28].mxu0 }
 0x14a   :  { %v276_v7 = vadd.f32 %v275_v6, %v2882_v30  ;;  %v277_v8 = vpop.f32.mrb[29].mxu0 }
 0x14b   :  { %v278_v9 = vadd.f32 %v277_v8, %v2885_v31  ;;  %v279_v10 = vpop.f32.mrb[30].mxu0  ;;  %628 = vmatprep.mubr.bf16.mxu1 %v329_v5 }
 0x14c   :  { %v280_v11 = vadd.f32 %v279_v10, %v2882_v30  ;;  %v281_v12 = vpop.f32.mrb[31].mxu0  ;;  %629 = vmatmul.mubr.bf16.gmra.mrb[24].mxu1 %v328_v4  ;;  %v312_v14 = vmax.f32 %v276_v7, 0.0  ;;  %v2392_v30 = vld [vmem:[#allocation4] ss:$8 sps:$4 sm:$0xff]  }
 0x14d   :  { %v282_v13 = vadd.f32 %v281_v12, %v2885_v31  ;;  %v313_v16 = vmax.f32 %v278_v9, 0.0  ;;  %1267 = vmatpush1.bf16.msra.mxu1 %v2392_v30  ;;  %v2395_v31 = vld [vmem:[#allocation4 + $0x10] ss:$8 sps:$4 sm:$0xff]  }
 0x14e   :  { %v314_v15 = vmax.f32 %v280_v11, 0.0  ;;  %1268 = vmatprep.subr.bf16.mxu1 %v2397_v25 }
 0x14f   :  { %v315_v17 = vmax.f32 %v282_v13, 0.0 }
 0x150   :  { %v330_v18 = vpack.c.bf16 %v314_v15, %v312_v14 }
 0x151   :  { %v331_v19 = vpack.c.bf16 %v315_v17, %v313_v16  ;;  %1269 = vmatpush1.bf16.msra.mxu1 %v2395_v31 }
 0x152   :  { %1270 = vmatprep.subr.bf16.mxu1 %v2400_v26 }
 0x153   :  { %638 = vmatprep.mubr.bf16.mxu1 %v331_v19 }
 0x154   :  { %639 = vmatmul.mubr.bf16.gmra.mrb[28].mxu1 %v330_v18 }
 0x155   :  { %1271 = vmatpush1.bf16.msra.mxu1 %v2398_v28 }
 0x156   :  { %1272 = vmatprep.subr.bf16.mxu1 %v2403_v32 }
 0x159   :  { %1273 = vmatpush1.bf16.msra.mxu1 %v2401_v33 }
 0x15a   :  { %1274 = vmatprep.subr.bf16.mxu1 %v2406_v34 }
 0x15d   :  { %1275 = vmatpush1.bf16.msra.mxu1 %v2404_v35 }
 0x15e   :  { %1276 = vmatprep.subr.bf16.mxu1 %v2409_v36 }
 0x161   :  { %1277 = vmatpush1.bf16.msra.mxu1 %v2407_v37 }
 0x162   :  { %1278 = vmatprep.subr.bf16.mxu1 %v2412_v38 }
 0x165   :  { %1279 = vmatpush1.bf16.msra.mxu1 %v2410_v39 }
 0x166   :  { %1280 = vmatprep.subr.bf16.mxu1 %v2415_v40 }
 0x169   :  { %1281 = vmatpush1.bf16.msra.mxu1 %v2413_v41 }
 0x16a   :  { %1282 = vmatprep.subr.bf16.mxu1 %v2418_v42 }
 0x16d   :  { %1283 = vmatpush1.bf16.msra.mxu1 %v2416_v43 }
 0x16e   :  { %1284 = vmatprep.subr.bf16.mxu1 %v2421_v44 }
 0x171   :  { %1285 = vmatpush1.bf16.msra.mxu1 %v2419_v45 }
 0x172   :  { %1286 = vmatprep.subr.bf16.mxu1 %v2424_v46 }
 0x175   :  { %1287 = vmatpush1.bf16.msra.mxu1 %v2422_v47 }
 0x176   :  { %1288 = vmatprep.subr.bf16.mxu1 %v2427_v48 }
 0x179   :  { %1289 = vmatpush1.bf16.msra.mxu1 %v2425_v49 }
 0x17a   :  { %1290 = vmatprep.subr.bf16.mxu1 %v2430_v50 }
 0x17d   :  { %1291 = vmatpush1.bf16.msra.mxu1 %v2428_v51 }
 0x17e   :  { %1292 = vmatprep.subr.bf16.mxu1 %v2433_v52 }
 0x181   :  { %1293 = vmatpush1.bf16.msra.mxu1 %v2431_v53 }
 0x1ef   :  { %v570_v57 = vpop.f32.mrb[0].mxu1 }
 0x1f0   :  { %v571_v58 = vadd.f32 %v570_v57, %v2923_v55  ;;  %v572_v59 = vpop.f32.mrb[1].mxu1 }
 0x1f1   :  { %v573_v60 = vadd.f32 %v572_v59, %v2926_v56  ;;  %v574_v61 = vpop.f32.mrb[2].mxu1 }
 0x1f2   :  { %v575_v62 = vadd.f32 %v574_v61, %v2923_v55  ;;  %v576_v63 = vpop.f32.mrb[3].mxu1  ;;  %v649_v1 = vmax.f32 %v571_v58, 0.0 }
 0x1f3   :  { %v577_v0 = vadd.f32 %v576_v63, %v2926_v56  ;;  %v650_v3 = vmax.f32 %v573_v60, 0.0 }
 0x1f4   :  { %v651_v2 = vmax.f32 %v575_v62, 0.0 }
 0x1f5   :  { %v652_v4 = vmax.f32 %v577_v0, 0.0 }
 0x1f6   :  { %v681_v5 = vpack.c.bf16 %v651_v2, %v649_v1 }
 0x1f7   :  { %v682_v6 = vpack.c.bf16 %v652_v4, %v650_v3  ;;  %v580_v7 = vpop.f32.mrb[4].mxu1 }
 0x1f8   :  { %v581_v8 = vadd.f32 %v580_v7, %v2923_v55  ;;  %v582_v9 = vpop.f32.mrb[5].mxu1 }
 0x1f9   :  { %v583_v10 = vadd.f32 %v582_v9, %v2926_v56  ;;  %v584_v11 = vpop.f32.mrb[6].mxu1  ;;  %933 = vmatprep.mubr.bf16.mxu0 %v682_v6 }
 0x1fa   :  { %v585_v12 = vadd.f32 %v584_v11, %v2923_v55  ;;  %v586_v13 = vpop.f32.mrb[7].mxu1  ;;  %934 = vmatmul.mubr.bf16.vlgmr.msra.gmra.mrb[32].mxu0 %v681_v5  ;;  %v653_v15 = vmax.f32 %v581_v8, 0.0 }
 0x1fb   :  { %v587_v14 = vadd.f32 %v586_v13, %v2926_v56  ;;  %v654_v17 = vmax.f32 %v583_v10, 0.0 }
 0x1fc   :  { %v655_v16 = vmax.f32 %v585_v12, 0.0 }
 0x1fd   :  { %v656_v18 = vmax.f32 %v587_v14, 0.0 }
 0x1fe   :  { %v683_v19 = vpack.c.bf16 %v655_v16, %v653_v15 }
 0x1ff   :  { %v684_v20 = vpack.c.bf16 %v656_v18, %v654_v17  ;;  %v590_v21 = vpop.f32.mrb[8].mxu1 }
 0x200   :  { %v591_v22 = vadd.f32 %v590_v21, %v2923_v55  ;;  %v592_v23 = vpop.f32.mrb[9].mxu1 }
 0x201   :  { %v593_v30 = vadd.f32 %v592_v23, %v2926_v56  ;;  %v594_v24 = vpop.f32.mrb[10].mxu1  ;;  %943 = vmatprep.mubr.bf16.mxu0 %v684_v20 }
 0x202   :  { %v595_v25 = vadd.f32 %v594_v24, %v2923_v55  ;;  %v596_v31 = vpop.f32.mrb[11].mxu1  ;;  %944 = vmatmul.mubr.bf16.gmra.mrb[36].mxu0 %v683_v19  ;;  %v657_v28 = vmax.f32 %v591_v22, 0.0 }
 0x203   :  { %v597_v26 = vadd.f32 %v596_v31, %v2926_v56  ;;  %v658_v33 = vmax.f32 %v593_v30, 0.0 }
 0x204   :  { %v659_v32 = vmax.f32 %v595_v25, 0.0 }
 0x205   :  { %v660_v34 = vmax.f32 %v597_v26, 0.0 }
 0x206   :  { %v685_v35 = vpack.c.bf16 %v659_v32, %v657_v28 }
 0x207   :  { %v686_v36 = vpack.c.bf16 %v660_v34, %v658_v33  ;;  %v600_v37 = vpop.f32.mrb[12].mxu1 }
 0x208   :  { %v601_v38 = vadd.f32 %v600_v37, %v2923_v55  ;;  %v602_v39 = vpop.f32.mrb[13].mxu1 }
 0x209   :  { %v603_v40 = vadd.f32 %v602_v39, %v2926_v56  ;;  %v604_v41 = vpop.f32.mrb[14].mxu1  ;;  %953 = vmatprep.mubr.bf16.mxu0 %v686_v36 }
 0x20a   :  { %v605_v42 = vadd.f32 %v604_v41, %v2923_v55  ;;  %v606_v43 = vpop.f32.mrb[15].mxu1  ;;  %954 = vmatmul.mubr.bf16.gmra.mrb[40].mxu0 %v685_v35  ;;  %v661_v45 = vmax.f32 %v601_v38, 0.0 }
 0x20b   :  { %v607_v44 = vadd.f32 %v606_v43, %v2926_v56  ;;  %v662_v47 = vmax.f32 %v603_v40, 0.0 }
 0x20c   :  { %v663_v46 = vmax.f32 %v605_v42, 0.0 }
 0x20d   :  { %v664_v48 = vmax.f32 %v607_v44, 0.0 }
 0x20e   :  { %v687_v49 = vpack.c.bf16 %v663_v46, %v661_v45 }
 0x20f   :  { %v688_v50 = vpack.c.bf16 %v664_v48, %v662_v47  ;;  %v610_v51 = vpop.f32.mrb[16].mxu1  ;;  %v2436_v47 = vld [vmem:[#allocation4 + $0xe4] ss:$8 sps:$4 sm:$0xff]   ;;  %v2434_v48 = vld [vmem:[#allocation4 + $0xe0] ss:$8 sps:$4 sm:$0xff]  }
 0x210   :  { %v611_v52 = vadd.f32 %v610_v51, %v2923_v55  ;;  %v612_v53 = vpop.f32.mrb[17].mxu1  ;;  %1294 = vmatprep.subr.bf16.mxu1 %v2436_v47  ;;  %v2442_v51 = vld [vmem:[#allocation6 + $0x4] ss:$8 sps:$4 sm:$0xff]  }
 0x211   :  { %v613_v54 = vadd.f32 %v612_v53, %v2926_v56  ;;  %v614_v57 = vpop.f32.mrb[18].mxu1  ;;  %963 = vmatprep.mubr.bf16.mxu0 %v688_v50  ;;  %1295 = vmatpush1.bf16.msra.mxu1 %v2434_v48  ;;  %v2437_v50 = vld [vmem:[#allocation4 + $0xf0] ss:$8 sps:$4 sm:$0xff]   ;;  %v2448_v53 = vld [vmem:[#allocation6 + $0x24] ss:$8 sps:$4 sm:$0xff]  }
 0x212   :  { %v615_v58 = vadd.f32 %v614_v57, %v2923_v55  ;;  %v616_v59 = vpop.f32.mrb[19].mxu1  ;;  %964 = vmatmul.mubr.bf16.gmra.mrb[44].mxu0 %v687_v49  ;;  %v665_v61 = vmax.f32 %v611_v52, 0.0  ;;  %v2439_v49 = vld [vmem:[#allocation4 + $0xf4] ss:$8 sps:$4 sm:$0xff]   ;;  %1631 = vmatprep.subr.bf16.mxu0 %v2442_v51 }
 0x213   :  { %v617_v60 = vadd.f32 %v616_v59, %v2926_v56  ;;  %v666_v63 = vmax.f32 %v613_v54, 0.0  ;;  %1296 = vmatprep.subr.bf16.mxu1 %v2439_v49  ;;  %v2445_v52 = vld [vmem:[#allocation6 + $0x14] ss:$8 sps:$4 sm:$0xff]   ;;  %v2446_v54 = vld [vmem:[#allocation6 + $0x20] ss:$8 sps:$4 sm:$0xff]  }
 0x214   :  { %v667_v62 = vmax.f32 %v615_v58, 0.0  ;;  %v2451_v57 = vld [vmem:[#allocation6 + $0x34] ss:$8 sps:$4 sm:$0xff]   ;;  %v2449_v58 = vld [vmem:[#allocation6 + $0x30] ss:$8 sps:$4 sm:$0xff]  }
 0x215   :  { %v668_v0 = vmax.f32 %v617_v60, 0.0  ;;  %1297 = vmatpush1.bf16.msra.mxu1 %v2437_v50  ;;  %v2454_v59 = vld [vmem:[#allocation6 + $0x44] ss:$8 sps:$4 sm:$0xff]   ;;  %v2452_v60 = vld [vmem:[#allocation6 + $0x40] ss:$8 sps:$4 sm:$0xff]  }
 0x216   :  { %v689_v1 = vpack.c.bf16 %v667_v62, %v665_v61  ;;  %v2457_v61 = vld [vmem:[#allocation6 + $0x54] ss:$8 sps:$4 sm:$0xff]   ;;  %v2455_v62 = vld [vmem:[#allocation6 + $0x50] ss:$8 sps:$4 sm:$0xff]  }
 0x217   :  { %v690_v2 = vpack.c.bf16 %v668_v0, %v666_v63  ;;  %v620_v3 = vpop.f32.mrb[20].mxu1  ;;  %v2460_v63 = vld [vmem:[#allocation6 + $0x64] ss:$8 sps:$4 sm:$0xff]   ;;  %v2458_v0 = vld [vmem:[#allocation6 + $0x60] ss:$8 sps:$4 sm:$0xff]  }
 0x218   :  { %v621_v4 = vadd.f32 %v620_v3, %v2923_v55  ;;  %v622_v5 = vpop.f32.mrb[21].mxu1  ;;  %v2466_v3 = vld [vmem:[#allocation6 + $0x84] ss:$8 sps:$4 sm:$0xff]  }
 0x219   :  { %v623_v6 = vadd.f32 %v622_v5, %v2926_v56  ;;  %v624_v7 = vpop.f32.mrb[22].mxu1  ;;  %973 = vmatprep.mubr.bf16.mxu0 %v690_v2  ;;  %v2461_v2 = vld [vmem:[#allocation6 + $0x70] ss:$8 sps:$4 sm:$0xff]   ;;  %v2469_v5 = vld [vmem:[#allocation6 + $0x94] ss:$8 sps:$4 sm:$0xff]  }
 0x21a   :  { %v625_v8 = vadd.f32 %v624_v7, %v2923_v55  ;;  %v626_v9 = vpop.f32.mrb[23].mxu1  ;;  %974 = vmatmul.mubr.bf16.gmra.mrb[48].mxu0 %v689_v1  ;;  %v669_v11 = vmax.f32 %v621_v4, 0.0  ;;  %v2463_v1 = vld [vmem:[#allocation6 + $0x74] ss:$8 sps:$4 sm:$0xff]   ;;  %v2464_v4 = vld [vmem:[#allocation6 + $0x80] ss:$8 sps:$4 sm:$0xff]  }
 0x21b   :  { %v627_v10 = vadd.f32 %v626_v9, %v2926_v56  ;;  %v670_v13 = vmax.f32 %v623_v6, 0.0  ;;  %v2467_v6 = vld [vmem:[#allocation6 + $0x90] ss:$8 sps:$4 sm:$0xff]   ;;  %v2472_v7 = vld [vmem:[#allocation6 + $0xa4] ss:$8 sps:$4 sm:$0xff]  }
 0x21c   :  { %v671_v12 = vmax.f32 %v625_v8, 0.0  ;;  %v2470_v8 = vld [vmem:[#allocation6 + $0xa0] ss:$8 sps:$4 sm:$0xff]   ;;  %v2475_v9 = vld [vmem:[#allocation6 + $0xb4] ss:$8 sps:$4 sm:$0xff]  }
 0x21d   :  { %v672_v14 = vmax.f32 %v627_v10, 0.0  ;;  %v2473_v10 = vld [vmem:[#allocation6 + $0xb0] ss:$8 sps:$4 sm:$0xff]  }
 0x21e   :  { %v691_v15 = vpack.c.bf16 %v671_v12, %v669_v11  ;;  %v2478_v11 = vld [vmem:[#allocation6 + $0xc4] ss:$8 sps:$4 sm:$0xff]   ;;  %v2476_v12 = vld [vmem:[#allocation6 + $0xc0] ss:$8 sps:$4 sm:$0xff]  }
 0x21f   :  { %v692_v16 = vpack.c.bf16 %v672_v14, %v670_v13  ;;  %v630_v17 = vpop.f32.mrb[24].mxu1  ;;  %v2481_v13 = vld [vmem:[#allocation6 + $0xd4] ss:$8 sps:$4 sm:$0xff]   ;;  %v2479_v14 = vld [vmem:[#allocation6 + $0xd0] ss:$8 sps:$4 sm:$0xff]  }
 0x220   :  { %v631_v18 = vadd.f32 %v630_v17, %v2923_v55  ;;  %v632_v19 = vpop.f32.mrb[25].mxu1 }
 0x221   :  { %v633_v20 = vadd.f32 %v632_v19, %v2926_v56  ;;  %v634_v21 = vpop.f32.mrb[26].mxu1  ;;  %983 = vmatprep.mubr.bf16.mxu0 %v692_v16 }
 0x222   :  { %v635_v22 = vadd.f32 %v634_v21, %v2923_v55  ;;  %v636_v23 = vpop.f32.mrb[27].mxu1  ;;  %984 = vmatmul.mubr.bf16.gmra.mrb[52].mxu0 %v691_v15  ;;  %v673_v24 = vmax.f32 %v631_v18, 0.0  ;;  %v729_v15 = vld [vmem:[%s3238_s6] sm:$0x3] }
 0x223   :  { %v637_v30 = vadd.f32 %v636_v23, %v2926_v56  ;;  %v674_v31 = vmax.f32 %v633_v20, 0.0  ;;  %v2964_v16 = vrot.slane %v729_v15, %v2874_v27  ;;  %v2967_v17 = vrot.slane %v729_v15, %v2879_v29 }
 0x224   :  { %v675_v25 = vmax.f32 %v635_v22, 0.0 }
 0x225   :  { %v676_v26 = vmax.f32 %v637_v30, 0.0 }
 0x226   :  { %v693_v28 = vpack.c.bf16 %v675_v25, %v673_v24 }
 0x227   :  { %v694_v32 = vpack.c.bf16 %v676_v26, %v674_v31  ;;  %v640_v33 = vpop.f32.mrb[28].mxu1 }
 0x228   :  { %v641_v34 = vadd.f32 %v640_v33, %v2923_v55  ;;  %v642_v35 = vpop.f32.mrb[29].mxu1 }
 0x229   :  { %v643_v36 = vadd.f32 %v642_v35, %v2926_v56  ;;  %v644_v37 = vpop.f32.mrb[30].mxu1  ;;  %993 = vmatprep.mubr.bf16.mxu0 %v694_v32 }
 0x22a   :  { %v645_v38 = vadd.f32 %v644_v37, %v2923_v55  ;;  %v646_v39 = vpop.f32.mrb[31].mxu1  ;;  %994 = vmatmul.mubr.bf16.gmra.mrb[56].mxu0 %v693_v28  ;;  %v677_v41 = vmax.f32 %v641_v34, 0.0  ;;  %v2440_v55 = vld [vmem:[#allocation6] ss:$8 sps:$4 sm:$0xff]  }
 0x22b   :  { %v647_v40 = vadd.f32 %v646_v39, %v2926_v56  ;;  %v678_v43 = vmax.f32 %v643_v36, 0.0  ;;  %1632 = vmatpush1.bf16.msra.mxu0 %v2440_v55  ;;  %v2443_v56 = vld [vmem:[#allocation6 + $0x10] ss:$8 sps:$4 sm:$0xff]  }
 0x22c   :  { %v679_v42 = vmax.f32 %v645_v38, 0.0  ;;  %1633 = vmatprep.subr.bf16.mxu0 %v2445_v52 }
 0x22d   :  { %v680_v44 = vmax.f32 %v647_v40, 0.0 }
 0x22e   :  { %v695_v45 = vpack.c.bf16 %v679_v42, %v677_v41 }
 0x22f   :  { %v696_v46 = vpack.c.bf16 %v680_v44, %v678_v43  ;;  %1634 = vmatpush1.bf16.msra.mxu0 %v2443_v56 }
 0x230   :  { %1635 = vmatprep.subr.bf16.mxu0 %v2448_v53 }
 0x231   :  { %1003 = vmatprep.mubr.bf16.mxu0 %v696_v46 }
 0x232   :  { %1004 = vmatmul.mubr.bf16.gmra.mrb[60].mxu0 %v695_v45 }
 0x233   :  { %1636 = vmatpush1.bf16.msra.mxu0 %v2446_v54 }
 0x234   :  { %1637 = vmatprep.subr.bf16.mxu0 %v2451_v57 }
 0x237   :  { %1638 = vmatpush1.bf16.msra.mxu0 %v2449_v58 }
 0x238   :  { %1639 = vmatprep.subr.bf16.mxu0 %v2454_v59 }
 0x23b   :  { %1640 = vmatpush1.bf16.msra.mxu0 %v2452_v60 }
 0x23c   :  { %1641 = vmatprep.subr.bf16.mxu0 %v2457_v61 }
 0x23f   :  { %1642 = vmatpush1.bf16.msra.mxu0 %v2455_v62 }
 0x240   :  { %1643 = vmatprep.subr.bf16.mxu0 %v2460_v63 }
 0x243   :  { %1644 = vmatpush1.bf16.msra.mxu0 %v2458_v0 }
 0x244   :  { %1645 = vmatprep.subr.bf16.mxu0 %v2463_v1 }
 0x247   :  { %1646 = vmatpush1.bf16.msra.mxu0 %v2461_v2 }
 0x248   :  { %1647 = vmatprep.subr.bf16.mxu0 %v2466_v3 }
 0x24b   :  { %1648 = vmatpush1.bf16.msra.mxu0 %v2464_v4 }
 0x24c   :  { %1649 = vmatprep.subr.bf16.mxu0 %v2469_v5 }
 0x24f   :  { %1650 = vmatpush1.bf16.msra.mxu0 %v2467_v6 }
 0x250   :  { %1651 = vmatprep.subr.bf16.mxu0 %v2472_v7 }
 0x253   :  { %1652 = vmatpush1.bf16.msra.mxu0 %v2470_v8 }
 0x254   :  { %1653 = vmatprep.subr.bf16.mxu0 %v2475_v9 }
 0x257   :  { %1654 = vmatpush1.bf16.msra.mxu0 %v2473_v10 }
 0x258   :  { %1655 = vmatprep.subr.bf16.mxu0 %v2478_v11 }
 0x25b   :  { %1656 = vmatpush1.bf16.msra.mxu0 %v2476_v12 }
 0x25c   :  { %1657 = vmatprep.subr.bf16.mxu0 %v2481_v13 }
 0x25f   :  { %1658 = vmatpush1.bf16.msra.mxu0 %v2479_v14 }
 0x2cd   :  { %v935_v18 = vpop.f32.mrb[32].mxu0 }
 0x2ce   :  { %v936_v19 = vadd.f32 %v935_v18, %v2964_v16  ;;  %v937_v20 = vpop.f32.mrb[33].mxu0 }
 0x2cf   :  { %v938_v21 = vadd.f32 %v937_v20, %v2967_v17  ;;  %v939_v22 = vpop.f32.mrb[34].mxu0 }
 0x2d0   :  { %v940_v23 = vadd.f32 %v939_v22, %v2964_v16  ;;  %v941_v30 = vpop.f32.mrb[35].mxu0  ;;  %v1014_v25 = vmax.f32 %v936_v19, 0.0 }
 0x2d1   :  { %v942_v24 = vadd.f32 %v941_v30, %v2967_v17  ;;  %v1015_v26 = vmax.f32 %v938_v21, 0.0 }
 0x2d2   :  { %v1016_v31 = vmax.f32 %v940_v23, 0.0 }
 0x2d3   :  { %v1017_v28 = vmax.f32 %v942_v24, 0.0 }
 0x2d4   :  { %v1046_v32 = vpack.c.bf16 %v1016_v31, %v1014_v25 }
 0x2d5   :  { %v1047_v33 = vpack.c.bf16 %v1017_v28, %v1015_v26  ;;  %v945_v34 = vpop.f32.mrb[36].mxu0 }
 0x2d6   :  { %v946_v35 = vadd.f32 %v945_v34, %v2964_v16  ;;  %v947_v36 = vpop.f32.mrb[37].mxu0 }
 0x2d7   :  { %v948_v37 = vadd.f32 %v947_v36, %v2967_v17  ;;  %v949_v38 = vpop.f32.mrb[38].mxu0  ;;  %1298 = vmatprep.mubr.bf16.mxu1 %v1047_v33 }
 0x2d8   :  { %v950_v39 = vadd.f32 %v949_v38, %v2964_v16  ;;  %v951_v40 = vpop.f32.mrb[39].mxu0  ;;  %1299 = vmatmul.mubr.bf16.vlgmr.msra.gmra.mrb[32].mxu1 %v1046_v32  ;;  %v1018_v42 = vmax.f32 %v946_v35, 0.0 }
 0x2d9   :  { %v952_v41 = vadd.f32 %v951_v40, %v2967_v17  ;;  %v1019_v44 = vmax.f32 %v948_v37, 0.0 }
 0x2da   :  { %v1020_v43 = vmax.f32 %v950_v39, 0.0 }
 0x2db   :  { %v1021_v45 = vmax.f32 %v952_v41, 0.0 }
 0x2dc   :  { %v1048_v46 = vpack.c.bf16 %v1020_v43, %v1018_v42 }
 0x2dd   :  { %v1049_v47 = vpack.c.bf16 %v1021_v45, %v1019_v44  ;;  %v955_v48 = vpop.f32.mrb[40].mxu0 }
 0x2de   :  { %v956_v49 = vadd.f32 %v955_v48, %v2964_v16  ;;  %v957_v50 = vpop.f32.mrb[41].mxu0 }
 0x2df   :  { %v958_v55 = vadd.f32 %v957_v50, %v2967_v17  ;;  %v959_v51 = vpop.f32.mrb[42].mxu0  ;;  %1308 = vmatprep.mubr.bf16.mxu1 %v1049_v47 }
 0x2e0   :  { %v960_v52 = vadd.f32 %v959_v51, %v2964_v16  ;;  %v961_v56 = vpop.f32.mrb[43].mxu0  ;;  %1309 = vmatmul.mubr.bf16.gmra.mrb[36].mxu1 %v1048_v46  ;;  %v1022_v54 = vmax.f32 %v956_v49, 0.0 }
 0x2e1   :  { %v962_v53 = vadd.f32 %v961_v56, %v2967_v17  ;;  %v1023_v58 = vmax.f32 %v958_v55, 0.0 }
 0x2e2   :  { %v1024_v57 = vmax.f32 %v960_v52, 0.0 }
 0x2e3   :  { %v1025_v59 = vmax.f32 %v962_v53, 0.0 }
 0x2e4   :  { %v1050_v60 = vpack.c.bf16 %v1024_v57, %v1022_v54 }
 0x2e5   :  { %v1051_v61 = vpack.c.bf16 %v1025_v59, %v1023_v58  ;;  %v965_v62 = vpop.f32.mrb[44].mxu0 }
 0x2e6   :  { %v966_v63 = vadd.f32 %v965_v62, %v2964_v16  ;;  %v967_v0 = vpop.f32.mrb[45].mxu0 }
 0x2e7   :  { %v968_v1 = vadd.f32 %v967_v0, %v2967_v17  ;;  %v969_v2 = vpop.f32.mrb[46].mxu0  ;;  %1318 = vmatprep.mubr.bf16.mxu1 %v1051_v61 }
 0x2e8   :  { %v970_v3 = vadd.f32 %v969_v2, %v2964_v16  ;;  %v971_v4 = vpop.f32.mrb[47].mxu0  ;;  %1319 = vmatmul.mubr.bf16.gmra.mrb[40].mxu1 %v1050_v60  ;;  %v1026_v6 = vmax.f32 %v966_v63, 0.0 }
 0x2e9   :  { %v972_v5 = vadd.f32 %v971_v4, %v2967_v17  ;;  %v1027_v8 = vmax.f32 %v968_v1, 0.0 }
 0x2ea   :  { %v1028_v7 = vmax.f32 %v970_v3, 0.0 }
 0x2eb   :  { %v1029_v9 = vmax.f32 %v972_v5, 0.0 }
 0x2ec   :  { %v1052_v10 = vpack.c.bf16 %v1028_v7, %v1026_v6 }
 0x2ed   :  { %v1053_v11 = vpack.c.bf16 %v1029_v9, %v1027_v8  ;;  %v975_v12 = vpop.f32.mrb[48].mxu0  ;;  %v2484_v8 = vld [vmem:[#allocation6 + $0xe4] ss:$8 sps:$4 sm:$0xff]   ;;  %v2482_v9 = vld [vmem:[#allocation6 + $0xe0] ss:$8 sps:$4 sm:$0xff]  }
 0x2ee   :  { %v976_v13 = vadd.f32 %v975_v12, %v2964_v16  ;;  %v977_v14 = vpop.f32.mrb[49].mxu0  ;;  %1659 = vmatprep.subr.bf16.mxu0 %v2484_v8  ;;  %v2490_v12 = vld [vmem:[%s3243_s11 + $0x48] sm:$0xff]  }
 0x2ef   :  { %v978_v15 = vadd.f32 %v977_v14, %v2967_v17  ;;  %v979_v18 = vpop.f32.mrb[50].mxu0  ;;  %1328 = vmatprep.mubr.bf16.mxu1 %v1053_v11  ;;  %1660 = vmatpush1.bf16.msra.mxu0 %v2482_v9  ;;  %v2485_v11 = vld [vmem:[#allocation6 + $0xf0] ss:$8 sps:$4 sm:$0xff]  }
 0x2f0   :  { %v980_v19 = vadd.f32 %v979_v18, %v2964_v16  ;;  %v981_v20 = vpop.f32.mrb[51].mxu0  ;;  %1329 = vmatmul.mubr.bf16.gmra.mrb[44].mxu1 %v1052_v10  ;;  %v1030_v22 = vmax.f32 %v976_v13, 0.0  ;;  %v2487_v10 = vld [vmem:[#allocation6 + $0xf4] ss:$8 sps:$4 sm:$0xff]   ;;  %v2491_v13 = vld [vmem:[%s3243_s11 + $0x8] sm:$0xff]  }
 0x2f1   :  { %v982_v21 = vadd.f32 %v981_v20, %v2967_v17  ;;  %v1031_v30 = vmax.f32 %v978_v15, 0.0  ;;  %1661 = vmatprep.subr.bf16.mxu0 %v2487_v10  ;;  %v2492_v14 = vld [vmem:[%s3243_s11 + $0x50] sm:$0xff]   ;;  %v2494_v18 = vld [vmem:[%s3243_s11 + $0x58] sm:$0xff]   ;;  %v3030_v20 = vld [vmem:[%s3243_s11 + $0x60] sm:$0xff]  }
 0x2f2   :  { %v1032_v23 = vmax.f32 %v980_v19, 0.0  ;;  %v2493_v15 = vld [vmem:[%s3243_s11 + $0x10] sm:$0xff]   ;;  %v3025_v19 = vld [vmem:[%s3243_s11 + $0x18] sm:$0xff]  }
 0x2f3   :  { %v1033_v24 = vmax.f32 %v982_v21, 0.0  ;;  %1662 = vmatpush1.bf16.msra.mxu0 %v2485_v11  ;;  %v3037_v21 = vld [vmem:[%s3243_s11 + $0x20] sm:$0xff]  }
 0x2f4   :  { %v1054_v25 = vpack.c.bf16 %v1032_v23, %v1030_v22  ;;  %v3042_v22 = vld [vmem:[%s3243_s11 + $0x68] sm:$0xff]   ;;  %v1094_v23 = vld [vmem:[%s3240_s8] sm:$0x3] }
 0x2f5   :  { %v1055_v31 = vpack.c.bf16 %v1033_v24, %v1031_v30  ;;  %v985_v26 = vpop.f32.mrb[52].mxu0  ;;  %v3050_v30 = vrot.slane %v1094_v23, %v2874_v27  ;;  %v3053_v24 = vrot.slane %v1094_v23, %v2879_v29 }
 0x2f6   :  { %v986_v28 = vadd.f32 %v985_v26, %v2964_v16  ;;  %v987_v32 = vpop.f32.mrb[53].mxu0 }
 0x2f7   :  { %v988_v33 = vadd.f32 %v987_v32, %v2967_v17  ;;  %v989_v34 = vpop.f32.mrb[54].mxu0  ;;  %1338 = vmatprep.mubr.bf16.mxu1 %v1055_v31 }
 0x2f8   :  { %v990_v35 = vadd.f32 %v989_v34, %v2964_v16  ;;  %v991_v36 = vpop.f32.mrb[55].mxu0  ;;  %1339 = vmatmul.mubr.bf16.gmra.mrb[48].mxu1 %v1054_v25  ;;  %v1034_v38 = vmax.f32 %v986_v28, 0.0 }
 0x2f9   :  { %v992_v37 = vadd.f32 %v991_v36, %v2967_v17  ;;  %v1035_v40 = vmax.f32 %v988_v33, 0.0 }
 0x2fa   :  { %v1036_v39 = vmax.f32 %v990_v35, 0.0 }
 0x2fb   :  { %v1037_v41 = vmax.f32 %v992_v37, 0.0 }
 0x2fc   :  { %v1056_v42 = vpack.c.bf16 %v1036_v39, %v1034_v38 }
 0x2fd   :  { %v1057_v43 = vpack.c.bf16 %v1037_v41, %v1035_v40  ;;  %v995_v44 = vpop.f32.mrb[56].mxu0 }
 0x2fe   :  { %v996_v45 = vadd.f32 %v995_v44, %v2964_v16  ;;  %v997_v46 = vpop.f32.mrb[57].mxu0 }
 0x2ff   :  { %v998_v47 = vadd.f32 %v997_v46, %v2967_v17  ;;  %v999_v48 = vpop.f32.mrb[58].mxu0  ;;  %1348 = vmatprep.mubr.bf16.mxu1 %v1057_v43 }
 0x300   :  { %v1000_v49 = vadd.f32 %v999_v48, %v2964_v16  ;;  %v1001_v50 = vpop.f32.mrb[59].mxu0  ;;  %1349 = vmatmul.mubr.bf16.gmra.mrb[52].mxu1 %v1056_v42  ;;  %v1038_v51 = vmax.f32 %v996_v45, 0.0 }
 0x301   :  { %v1002_v55 = vadd.f32 %v1001_v50, %v2967_v17  ;;  %v1039_v56 = vmax.f32 %v998_v47, 0.0 }
 0x302   :  { %v1040_v52 = vmax.f32 %v1000_v49, 0.0 }
 0x303   :  { %v1041_v53 = vmax.f32 %v1002_v55, 0.0 }
 0x304   :  { %v1058_v54 = vpack.c.bf16 %v1040_v52, %v1038_v51 }
 0x305   :  { %v1059_v57 = vpack.c.bf16 %v1041_v53, %v1039_v56  ;;  %v1005_v58 = vpop.f32.mrb[60].mxu0 }
 0x306   :  { %v1006_v59 = vadd.f32 %v1005_v58, %v2964_v16  ;;  %v1007_v60 = vpop.f32.mrb[61].mxu0 }
 0x307   :  { %v1008_v61 = vadd.f32 %v1007_v60, %v2967_v17  ;;  %v1009_v62 = vpop.f32.mrb[62].mxu0  ;;  %1358 = vmatprep.mubr.bf16.mxu1 %v1059_v57 }
 0x308   :  { %v1010_v63 = vadd.f32 %v1009_v62, %v2964_v16  ;;  %v1011_v0 = vpop.f32.mrb[63].mxu0  ;;  %1359 = vmatmul.mubr.bf16.gmra.mrb[56].mxu1 %v1058_v54  ;;  %v1042_v2 = vmax.f32 %v1006_v59, 0.0  ;;  %v2488_v16 = vld [vmem:[%s3243_s11 + $0x40] sm:$0xff]  }
 0x309   :  { %v1012_v1 = vadd.f32 %v1011_v0, %v2967_v17  ;;  %v1043_v4 = vmax.f32 %v1008_v61, 0.0  ;;  %v2489_v17 = vld [vmem:[%s3243_s11] sm:$0xff]   ;;  %2268 = vmatprep.subr.bf16.mxu1 %v2488_v16  ;;  %2204 = vmatprep.subr.bf16.mxu0 %v2488_v16 }
 0x30a   :  { %v1044_v3 = vmax.f32 %v1010_v63, 0.0  ;;  %2276 = vmatpush3.bf16.msra.mxu1 %v2489_v17 }
 0x30b   :  { %v1045_v5 = vmax.f32 %v1012_v1, 0.0  ;;  %2269 = vmatprep.subr.bf16.mxu1 %v2490_v12 }
 0x30c   :  { %v1060_v6 = vpack.c.bf16 %v1044_v3, %v1042_v2 }
 0x30d   :  { %v1061_v7 = vpack.c.bf16 %v1045_v5, %v1043_v4 }
 0x30e   :  { %2277 = vmatpush3.bf16.msra.mxu1 %v2491_v13 }
 0x30f   :  { %1368 = vmatprep.mubr.bf16.mxu1 %v1061_v7  ;;  %2270 = vmatprep.subr.bf16.mxu1 %v2492_v14 }
 0x310   :  { %1369 = vmatmul.mubr.bf16.gmra.mrb[60].mxu1 %v1060_v6 }
 0x312   :  { %2278 = vmatpush3.bf16.msra.mxu1 %v2493_v15 }
 0x313   :  { %2271 = vmatprep.subr.bf16.mxu1 %v2494_v18 }
 0x316   :  { %2279 = vmatpush3.bf16.msra.mxu1 %v3025_v19 }
 0x317   :  { %2272 = vmatprep.subr.bf16.mxu1 %v3030_v20 }
 0x31a   :  { %2280 = vmatpush3.bf16.msra.mxu1 %v3037_v21 }
 0x31b   :  { %2273 = vmatprep.subr.bf16.mxu1 %v3042_v22 }
 0x3ab   :  { %v1300_v25 = vpop.f32.mrb[32].mxu1 }
 0x3ac   :  { %v1301_v31 = vadd.f32 %v1300_v25, %v3050_v30  ;;  %v1302_v26 = vpop.f32.mrb[33].mxu1 }
 0x3ad   :  { %v1303_v28 = vadd.f32 %v1302_v26, %v3053_v24  ;;  %v1304_v32 = vpop.f32.mrb[34].mxu1 }
 0x3ae   :  { %v1305_v33 = vadd.f32 %v1304_v32, %v3050_v30  ;;  %v1306_v34 = vpop.f32.mrb[35].mxu1  ;;  %v1379_v36 = vmax.f32 %v1301_v31, 0.0 }
 0x3af   :  { %v1307_v35 = vadd.f32 %v1306_v34, %v3053_v24  ;;  %v1380_v38 = vmax.f32 %v1303_v28, 0.0 }
 0x3b0   :  { %v1381_v37 = vmax.f32 %v1305_v33, 0.0 }
 0x3b1   :  { %v1382_v39 = vmax.f32 %v1307_v35, 0.0 }
 0x3b2   :  { %v1411_v40 = vpack.c.bf16 %v1381_v37, %v1379_v36 }
 0x3b3   :  { %v1412_v41 = vpack.c.bf16 %v1382_v39, %v1380_v38  ;;  %v1310_v42 = vpop.f32.mrb[36].mxu1 }
 0x3b4   :  { %v1311_v43 = vadd.f32 %v1310_v42, %v3050_v30  ;;  %v1312_v44 = vpop.f32.mrb[37].mxu1 }
 0x3b5   :  { %v1313_v45 = vadd.f32 %v1312_v44, %v3053_v24  ;;  %v1314_v46 = vpop.f32.mrb[38].mxu1  ;;  %1663 = vmatprep.mubr.bf16.mxu0 %v1412_v41 }
 0x3b6   :  { %v1315_v47 = vadd.f32 %v1314_v46, %v3050_v30  ;;  %v1316_v48 = vpop.f32.mrb[39].mxu1  ;;  %1664 = vmatmul.mubr.bf16.vlgmr.msra.gmra.mrb[64].mxu0 %v1411_v40  ;;  %v1383_v50 = vmax.f32 %v1311_v43, 0.0 }
 0x3b7   :  { %v1317_v49 = vadd.f32 %v1316_v48, %v3053_v24  ;;  %2205 = vmatpush3.bf16.msra.mxu0 %v2489_v17  ;;  %v1384_v51 = vmax.f32 %v1313_v45, 0.0 }
 0x3b8   :  { %v1385_v55 = vmax.f32 %v1315_v47, 0.0  ;;  %2206 = vmatprep.subr.bf16.mxu0 %v2490_v12 }
 0x3b9   :  { %v1386_v52 = vmax.f32 %v1317_v49, 0.0 }
 0x3ba   :  { %v1413_v56 = vpack.c.bf16 %v1385_v55, %v1383_v50 }
 0x3bb   :  { %v1414_v53 = vpack.c.bf16 %v1386_v52, %v1384_v51  ;;  %v1320_v54 = vpop.f32.mrb[40].mxu1  ;;  %2207 = vmatpush3.bf16.msra.mxu0 %v2491_v13 }
 0x3bc   :  { %v1321_v57 = vadd.f32 %v1320_v54, %v3050_v30  ;;  %v1322_v58 = vpop.f32.mrb[41].mxu1  ;;  %2208 = vmatprep.subr.bf16.mxu0 %v2492_v14 }
 0x3bd   :  { %v1323_v59 = vadd.f32 %v1322_v58, %v3053_v24  ;;  %v1324_v60 = vpop.f32.mrb[42].mxu1  ;;  %1673 = vmatprep.mubr.bf16.mxu0 %v1414_v53 }
 0x3be   :  { %v1325_v61 = vadd.f32 %v1324_v60, %v3050_v30  ;;  %v1326_v62 = vpop.f32.mrb[43].mxu1  ;;  %1674 = vmatmul.mubr.bf16.gmra.mrb[68].mxu0 %v1413_v56  ;;  %v1387_v0 = vmax.f32 %v1321_v57, 0.0 }
 0x3bf   :  { %v1327_v63 = vadd.f32 %v1326_v62, %v3053_v24  ;;  %2209 = vmatpush3.bf16.msra.mxu0 %v2493_v15  ;;  %v1388_v2 = vmax.f32 %v1323_v59, 0.0 }
 0x3c0   :  { %v1389_v1 = vmax.f32 %v1325_v61, 0.0  ;;  %2210 = vmatprep.subr.bf16.mxu0 %v2494_v18 }
 0x3c1   :  { %v1390_v3 = vmax.f32 %v1327_v63, 0.0 }
 0x3c2   :  { %v1415_v4 = vpack.c.bf16 %v1389_v1, %v1387_v0 }
 0x3c3   :  { %v1416_v5 = vpack.c.bf16 %v1390_v3, %v1388_v2  ;;  %v1330_v6 = vpop.f32.mrb[44].mxu1  ;;  %2211 = vmatpush3.bf16.msra.mxu0 %v3025_v19 }
 0x3c4   :  { %v1331_v7 = vadd.f32 %v1330_v6, %v3050_v30  ;;  %v1332_v8 = vpop.f32.mrb[45].mxu1  ;;  %2212 = vmatprep.subr.bf16.mxu0 %v3030_v20 }
 0x3c5   :  { %v1333_v9 = vadd.f32 %v1332_v8, %v3053_v24  ;;  %v1334_v10 = vpop.f32.mrb[46].mxu1  ;;  %1683 = vmatprep.mubr.bf16.mxu0 %v1416_v5 }
 0x3c6   :  { %v1335_v11 = vadd.f32 %v1334_v10, %v3050_v30  ;;  %v1336_v16 = vpop.f32.mrb[47].mxu1  ;;  %1684 = vmatmul.mubr.bf16.gmra.mrb[72].mxu0 %v1415_v4  ;;  %v1391_v12 = vmax.f32 %v1331_v7, 0.0 }
 0x3c7   :  { %v1337_v17 = vadd.f32 %v1336_v16, %v3053_v24  ;;  %2213 = vmatpush3.bf16.msra.mxu0 %v3037_v21  ;;  %v1392_v14 = vmax.f32 %v1333_v9, 0.0 }
 0x3c8   :  { %v1393_v13 = vmax.f32 %v1335_v11, 0.0  ;;  %2214 = vmatprep.subr.bf16.mxu0 %v3042_v22 }
 0x3c9   :  { %v1394_v15 = vmax.f32 %v1337_v17, 0.0 }
 0x3ca   :  { %v1417_v18 = vpack.c.bf16 %v1393_v13, %v1391_v12 }
 0x3cb   :  { %v1418_v19 = vpack.c.bf16 %v1394_v15, %v1392_v14  ;;  %v1340_v20 = vpop.f32.mrb[48].mxu1  ;;  %v2499_v14 = vld [vmem:[%s3243_s11 + $0x28] sm:$0xff]   ;;  %v2502_v15 = vld [vmem:[%s3243_s11 + $0x78] sm:$0xff]  }
 0x3cc   :  { %v1341_v23 = vadd.f32 %v1340_v20, %v3050_v30  ;;  %v1342_v25 = vpop.f32.mrb[49].mxu1  ;;  %2215 = vmatpush3.bf16.msra.mxu0 %v2499_v14  ;;  %2281 = vmatpush3.bf16.msra.mxu1 %v2499_v14 }
 0x3cd   :  { %v1343_v31 = vadd.f32 %v1342_v25, %v3053_v24  ;;  %v1344_v26 = vpop.f32.mrb[50].mxu1  ;;  %1693 = vmatprep.mubr.bf16.mxu0 %v1418_v19  ;;  %v1459_v19 = vld [vmem:[%s3242_s10] sm:$0x3] }
 0x3ce   :  { %v1345_v28 = vadd.f32 %v1344_v26, %v3050_v30  ;;  %v1346_v32 = vpop.f32.mrb[51].mxu1  ;;  %1694 = vmatmul.mubr.bf16.gmra.mrb[76].mxu0 %v1417_v18  ;;  %v1395_v33 = vmax.f32 %v1341_v23, 0.0  ;;  %v2503_v18 = vld [vmem:[%s3243_s11 + $0x38] sm:$0xff]   ;;  %v3110_v20 = vrot.slane %v1459_v19, %v2874_v27  ;;  %v3113_v23 = vrot.slane %v1459_v19, %v2879_v29 }
 0x3cf   :  { %v1347_v21 = vadd.f32 %v1346_v32, %v3053_v24  ;;  %v1396_v34 = vmax.f32 %v1343_v31, 0.0 }
 0x3d0   :  { %v1397_v22 = vmax.f32 %v1345_v28, 0.0 }
 0x3d1   :  { %v1398_v35 = vmax.f32 %v1347_v21, 0.0 }
 0x3d2   :  { %v1419_v36 = vpack.c.bf16 %v1397_v22, %v1395_v33 }
 0x3d3   :  { %v1420_v37 = vpack.c.bf16 %v1398_v35, %v1396_v34  ;;  %v1350_v38 = vpop.f32.mrb[52].mxu1 }
 0x3d4   :  { %v1351_v39 = vadd.f32 %v1350_v38, %v3050_v30  ;;  %v1352_v40 = vpop.f32.mrb[53].mxu1 }
 0x3d5   :  { %v1353_v41 = vadd.f32 %v1352_v40, %v3053_v24  ;;  %v1354_v42 = vpop.f32.mrb[54].mxu1  ;;  %1703 = vmatprep.mubr.bf16.mxu0 %v1420_v37 }
 0x3d6   :  { %v1355_v43 = vadd.f32 %v1354_v42, %v3050_v30  ;;  %v1356_v44 = vpop.f32.mrb[55].mxu1  ;;  %1704 = vmatmul.mubr.bf16.gmra.mrb[80].mxu0 %v1419_v36  ;;  %v1399_v46 = vmax.f32 %v1351_v39, 0.0 }
 0x3d7   :  { %v1357_v45 = vadd.f32 %v1356_v44, %v3053_v24  ;;  %v1400_v48 = vmax.f32 %v1353_v41, 0.0 }
 0x3d8   :  { %v1401_v47 = vmax.f32 %v1355_v43, 0.0 }
 0x3d9   :  { %v1402_v49 = vmax.f32 %v1357_v45, 0.0 }
 0x3da   :  { %v1421_v50 = vpack.c.bf16 %v1401_v47, %v1399_v46 }
 0x3db   :  { %v1422_v55 = vpack.c.bf16 %v1402_v49, %v1400_v48  ;;  %v1360_v51 = vpop.f32.mrb[56].mxu1 }
 0x3dc   :  { %v1361_v52 = vadd.f32 %v1360_v51, %v3050_v30  ;;  %v1362_v56 = vpop.f32.mrb[57].mxu1 }
 0x3dd   :  { %v1363_v53 = vadd.f32 %v1362_v56, %v3053_v24  ;;  %v1364_v54 = vpop.f32.mrb[58].mxu1  ;;  %1713 = vmatprep.mubr.bf16.mxu0 %v1422_v55 }
 0x3de   :  { %v1365_v57 = vadd.f32 %v1364_v54, %v3050_v30  ;;  %v1366_v58 = vpop.f32.mrb[59].mxu1  ;;  %1714 = vmatmul.mubr.bf16.gmra.mrb[84].mxu0 %v1421_v50  ;;  %v1403_v60 = vmax.f32 %v1361_v52, 0.0 }
 0x3df   :  { %v1367_v59 = vadd.f32 %v1366_v58, %v3053_v24  ;;  %v1404_v62 = vmax.f32 %v1363_v53, 0.0 }
 0x3e0   :  { %v1405_v61 = vmax.f32 %v1365_v57, 0.0 }
 0x3e1   :  { %v1406_v63 = vmax.f32 %v1367_v59, 0.0 }
 0x3e2   :  { %v1423_v0 = vpack.c.bf16 %v1405_v61, %v1403_v60 }
 0x3e3   :  { %v1424_v1 = vpack.c.bf16 %v1406_v63, %v1404_v62  ;;  %v1370_v2 = vpop.f32.mrb[60].mxu1 }
 0x3e4   :  { %v1371_v3 = vadd.f32 %v1370_v2, %v3050_v30  ;;  %v1372_v4 = vpop.f32.mrb[61].mxu1 }
 0x3e5   :  { %v1373_v5 = vadd.f32 %v1372_v4, %v3053_v24  ;;  %v1374_v6 = vpop.f32.mrb[62].mxu1  ;;  %1723 = vmatprep.mubr.bf16.mxu0 %v1424_v1 }
 0x3e6   :  { %v1375_v7 = vadd.f32 %v1374_v6, %v3050_v30  ;;  %v1376_v8 = vpop.f32.mrb[63].mxu1  ;;  %1724 = vmatmul.mubr.bf16.gmra.mrb[88].mxu0 %v1423_v0  ;;  %v1407_v10 = vmax.f32 %v1371_v3, 0.0  ;;  %v2500_v30 = vld [vmem:[%s3243_s11 + $0x70] sm:$0xff]  }
 0x3e7   :  { %v1377_v9 = vadd.f32 %v1376_v8, %v3053_v24  ;;  %v1408_v16 = vmax.f32 %v1373_v5, 0.0  ;;  %v2501_v24 = vld [vmem:[%s3243_s11 + $0x30] sm:$0xff]   ;;  %2216 = vmatprep.subr.bf16.mxu0 %v2500_v30  ;;  %2274 = vmatprep.subr.bf16.mxu1 %v2500_v30 }
 0x3e8   :  { %v1409_v11 = vmax.f32 %v1375_v7, 0.0  ;;  %2217 = vmatpush3.bf16.msra.mxu0 %v2501_v24  ;;  %2282 = vmatpush3.bf16.msra.mxu1 %v2501_v24 }
 0x3e9   :  { %v1410_v17 = vmax.f32 %v1377_v9, 0.0  ;;  %2218 = vmatprep.subr.bf16.mxu0 %v2502_v15  ;;  %2275 = vmatprep.subr.bf16.mxu1 %v2502_v15 }
 0x3ea   :  { %v1425_v12 = vpack.c.bf16 %v1409_v11, %v1407_v10 }
 0x3eb   :  { %v1426_v13 = vpack.c.bf16 %v1410_v17, %v1408_v16 }
 0x3ec   :  { %2219 = vmatpush3.bf16.msra.mxu0 %v2503_v18  ;;  %2283 = vmatpush3.bf16.msra.mxu1 %v2503_v18 }
 0x3ed   :  { %1733 = vmatprep.mubr.bf16.mxu0 %v1426_v13 }
 0x3ee   :  { %1734 = vmatmul.mubr.bf16.gmra.mrb[92].mxu0 %v1425_v12 }
 0x489   :  { %v1665_v25 = vpop.f32.mrb[64].mxu0 }
 0x48a   :  { %v1666_v31 = vadd.f32 %v1665_v25, %v3110_v20  ;;  %v1667_v26 = vpop.f32.mrb[65].mxu0 }
 0x48b   :  { %v1668_v28 = vadd.f32 %v1667_v26, %v3113_v23  ;;  %v1669_v32 = vpop.f32.mrb[66].mxu0 }
 0x48c   :  { %v1670_v21 = vadd.f32 %v1669_v32, %v3110_v20  ;;  %v1671_v33 = vpop.f32.mrb[67].mxu0  ;;  %v1744_v34 = vmax.f32 %v1666_v31, 0.0 }
 0x48d   :  { %v1672_v22 = vadd.f32 %v1671_v33, %v3113_v23  ;;  %v1745_v36 = vmax.f32 %v1668_v28, 0.0 }
 0x48e   :  { %v1746_v35 = vmax.f32 %v1670_v21, 0.0 }
 0x48f   :  { %v1747_v27 = vmax.f32 %v1672_v22, 0.0 }
 0x490   :  { %v1776_v37 = vpack.c.bf16 %v1746_v35, %v1744_v34 }
 0x491   :  { %v1777_v38 = vpack.c.bf16 %v1747_v27, %v1745_v36  ;;  %v1675_v29 = vpop.f32.mrb[68].mxu0 }
 0x492   :  { %v1676_v39 = vadd.f32 %v1675_v29, %v3110_v20  ;;  %v1677_v40 = vpop.f32.mrb[69].mxu0 }
 0x493   :  { %v1678_v41 = vadd.f32 %v1677_v40, %v3113_v23  ;;  %v1679_v42 = vpop.f32.mrb[70].mxu0  ;;  %1959 = vmatprep.mubr.bf16.mxu0 %v1777_v38 }
 0x494   :  { %v1680_v43 = vadd.f32 %v1679_v42, %v3110_v20  ;;  %v1681_v44 = vpop.f32.mrb[71].mxu0  ;;  %1960 = vmatmul.mubr.bf16.vlgmr.msra.gmra.mrb[96].mxu0 %v1776_v37  ;;  %v1748_v46 = vmax.f32 %v1676_v39, 0.0 }
 0x495   :  { %v1682_v45 = vadd.f32 %v1681_v44, %v3113_v23  ;;  %v1749_v48 = vmax.f32 %v1678_v41, 0.0 }
 0x496   :  { %v1750_v47 = vmax.f32 %v1680_v43, 0.0 }
 0x497   :  { %v1751_v49 = vmax.f32 %v1682_v45, 0.0 }
 0x498   :  { %v1778_v50 = vpack.c.bf16 %v1750_v47, %v1748_v46 }
 0x499   :  { %v1779_v55 = vpack.c.bf16 %v1751_v49, %v1749_v48  ;;  %v1685_v51 = vpop.f32.mrb[72].mxu0 }
 0x49a   :  { %v1686_v52 = vadd.f32 %v1685_v51, %v3110_v20  ;;  %v1687_v56 = vpop.f32.mrb[73].mxu0 }
 0x49b   :  { %v1688_v53 = vadd.f32 %v1687_v56, %v3113_v23  ;;  %v1689_v54 = vpop.f32.mrb[74].mxu0  ;;  %1967 = vmatprep.mubr.bf16.mxu0 %v1779_v55 }
 0x49c   :  { %v1690_v57 = vadd.f32 %v1689_v54, %v3110_v20  ;;  %v1691_v58 = vpop.f32.mrb[75].mxu0  ;;  %1968 = vmatmul.mubr.bf16.gmra.mrb[100].mxu0 %v1778_v50  ;;  %v1752_v60 = vmax.f32 %v1686_v52, 0.0 }
 0x49d   :  { %v1692_v59 = vadd.f32 %v1691_v58, %v3113_v23  ;;  %v1753_v62 = vmax.f32 %v1688_v53, 0.0 }
 0x49e   :  { %v1754_v61 = vmax.f32 %v1690_v57, 0.0 }
 0x49f   :  { %v1755_v63 = vmax.f32 %v1692_v59, 0.0 }
 0x4a0   :  { %v1780_v0 = vpack.c.bf16 %v1754_v61, %v1752_v60 }
 0x4a1   :  { %v1781_v1 = vpack.c.bf16 %v1755_v63, %v1753_v62  ;;  %v1695_v2 = vpop.f32.mrb[76].mxu0 }
 0x4a2   :  { %v1696_v3 = vadd.f32 %v1695_v2, %v3110_v20  ;;  %v1697_v4 = vpop.f32.mrb[77].mxu0 }
 0x4a3   :  { %v1698_v5 = vadd.f32 %v1697_v4, %v3113_v23  ;;  %v1699_v6 = vpop.f32.mrb[78].mxu0  ;;  %1975 = vmatprep.mubr.bf16.mxu0 %v1781_v1 }
 0x4a4   :  { %v1700_v7 = vadd.f32 %v1699_v6, %v3110_v20  ;;  %v1701_v8 = vpop.f32.mrb[79].mxu0  ;;  %1976 = vmatmul.mubr.bf16.gmra.mrb[104].mxu0 %v1780_v0  ;;  %v1756_v10 = vmax.f32 %v1696_v3, 0.0 }
 0x4a5   :  { %v1702_v9 = vadd.f32 %v1701_v8, %v3113_v23  ;;  %v1757_v16 = vmax.f32 %v1698_v5, 0.0 }
 0x4a6   :  { %v1758_v11 = vmax.f32 %v1700_v7, 0.0 }
 0x4a7   :  { %v1759_v17 = vmax.f32 %v1702_v9, 0.0 }
 0x4a8   :  { %v1782_v12 = vpack.c.bf16 %v1758_v11, %v1756_v10  ;;  %v3150_v11 = vld [vmem:[%s3244_s12] ss:$0 sm:$0xff] }
 0x4a9   :  { %v1783_v13 = vpack.c.bf16 %v1759_v17, %v1757_v16  ;;  %v1705_v14 = vpop.f32.mrb[80].mxu0 }
 0x4aa   :  { %v1706_v30 = vadd.f32 %v1705_v14, %v3110_v20  ;;  %v1707_v24 = vpop.f32.mrb[81].mxu0 }
 0x4ab   :  { %v1708_v15 = vadd.f32 %v1707_v24, %v3113_v23  ;;  %v1709_v18 = vpop.f32.mrb[82].mxu0  ;;  %1983 = vmatprep.mubr.bf16.mxu1 %v1783_v13 }
 0x4ac   :  { %v1710_v19 = vadd.f32 %v1709_v18, %v3110_v20  ;;  %v1711_v25 = vpop.f32.mrb[83].mxu0  ;;  %1984 = vmatmul.mubr.bf16.vlgmr.msra.gmra.mrb[64].mxu1 %v1782_v12  ;;  %v1760_v26 = vmax.f32 %v1706_v30, 0.0 }
 0x4ad   :  { %v1712_v31 = vadd.f32 %v1711_v25, %v3113_v23  ;;  %v1761_v32 = vmax.f32 %v1708_v15, 0.0 }
 0x4ae   :  { %v1762_v28 = vmax.f32 %v1710_v19, 0.0 }
 0x4af   :  { %v1763_v21 = vmax.f32 %v1712_v31, 0.0 }
 0x4b0   :  { %v1784_v33 = vpack.c.bf16 %v1762_v28, %v1760_v26 }
 0x4b1   :  { %v1785_v22 = vpack.c.bf16 %v1763_v21, %v1761_v32  ;;  %v1715_v34 = vpop.f32.mrb[84].mxu0 }
 0x4b2   :  { %v1716_v35 = vadd.f32 %v1715_v34, %v3110_v20  ;;  %v1717_v36 = vpop.f32.mrb[85].mxu0 }
 0x4b3   :  { %v1718_v27 = vadd.f32 %v1717_v36, %v3113_v23  ;;  %v1719_v37 = vpop.f32.mrb[86].mxu0  ;;  %1991 = vmatprep.mubr.bf16.mxu1 %v1785_v22 }
 0x4b4   :  { %v1720_v38 = vadd.f32 %v1719_v37, %v3110_v20  ;;  %v1721_v29 = vpop.f32.mrb[87].mxu0  ;;  %1992 = vmatmul.mubr.bf16.gmra.mrb[68].mxu1 %v1784_v33  ;;  %v1764_v40 = vmax.f32 %v1716_v35, 0.0 }
 0x4b5   :  { %v1722_v39 = vadd.f32 %v1721_v29, %v3113_v23  ;;  %v1765_v42 = vmax.f32 %v1718_v27, 0.0 }
 0x4b6   :  { %v1766_v41 = vmax.f32 %v1720_v38, 0.0 }
 0x4b7   :  { %v1767_v43 = vmax.f32 %v1722_v39, 0.0 }
 0x4b8   :  { %v1786_v44 = vpack.c.bf16 %v1766_v41, %v1764_v40 }
 0x4b9   :  { %v1787_v45 = vpack.c.bf16 %v1767_v43, %v1765_v42  ;;  %v1725_v46 = vpop.f32.mrb[88].mxu0 }
 0x4ba   :  { %v1726_v47 = vadd.f32 %v1725_v46, %v3110_v20  ;;  %v1727_v48 = vpop.f32.mrb[89].mxu0 }
 0x4bb   :  { %v1728_v49 = vadd.f32 %v1727_v48, %v3113_v23  ;;  %v1729_v50 = vpop.f32.mrb[90].mxu0  ;;  %1999 = vmatprep.mubr.bf16.mxu1 %v1787_v45 }
 0x4bc   :  { %v1730_v55 = vadd.f32 %v1729_v50, %v3110_v20  ;;  %v1731_v51 = vpop.f32.mrb[91].mxu0  ;;  %2000 = vmatmul.mubr.bf16.gmra.mrb[72].mxu1 %v1786_v44  ;;  %v1768_v56 = vmax.f32 %v1726_v47, 0.0 }
 0x4bd   :  { %v1732_v52 = vadd.f32 %v1731_v51, %v3113_v23  ;;  %v1769_v54 = vmax.f32 %v1728_v49, 0.0 }
 0x4be   :  { %v1770_v53 = vmax.f32 %v1730_v55, 0.0 }
 0x4bf   :  { %v1771_v57 = vmax.f32 %v1732_v52, 0.0 }
 0x4c0   :  { %v1788_v58 = vpack.c.bf16 %v1770_v53, %v1768_v56 }
 0x4c1   :  { %v1789_v59 = vpack.c.bf16 %v1771_v57, %v1769_v54  ;;  %v1735_v60 = vpop.f32.mrb[92].mxu0 }
 0x4c2   :  { %v1736_v61 = vadd.f32 %v1735_v60, %v3110_v20  ;;  %v1737_v62 = vpop.f32.mrb[93].mxu0 }
 0x4c3   :  { %v1738_v63 = vadd.f32 %v1737_v62, %v3113_v23  ;;  %v1739_v0 = vpop.f32.mrb[94].mxu0  ;;  %2007 = vmatprep.mubr.bf16.mxu1 %v1789_v59 }
 0x4c4   :  { %v1740_v1 = vadd.f32 %v1739_v0, %v3110_v20  ;;  %v1741_v2 = vpop.f32.mrb[95].mxu0  ;;  %2008 = vmatmul.mubr.bf16.gmra.mrb[76].mxu1 %v1788_v58  ;;  %v1772_v4 = vmax.f32 %v1736_v61, 0.0 }
 0x4c5   :  { %v1742_v3 = vadd.f32 %v1741_v2, %v3113_v23  ;;  %v1773_v6 = vmax.f32 %v1738_v63, 0.0 }
 0x4c6   :  { %v1774_v5 = vmax.f32 %v1740_v1, 0.0 }
 0x4c7   :  { %v1775_v7 = vmax.f32 %v1742_v3, 0.0 }
 0x4c8   :  { %v1790_v8 = vpack.c.bf16 %v1774_v5, %v1772_v4 }
 0x4c9   :  { %v1791_v9 = vpack.c.bf16 %v1775_v7, %v1773_v6 }
 0x4cb   :  { %2015 = vmatprep.mubr.bf16.mxu1 %v1791_v9 }
 0x4cc   :  { %2016 = vmatmul.mubr.bf16.gmra.mrb[80].mxu1 %v1790_v8 }
 0x567   :  { %v2220_v10 = vpop.f32.mrb[96].mxu0 }
 0x568   :  { %v2221_v16 = vpop.f32.mrb[97].mxu0 }
 0x569   :  { %v2222_v20 = vadd.f32 %v2221_v16, %v2220_v10  ;;  %v2223_v17 = vpop.f32.mrb[98].mxu0 }
 0x56a   :  { %v2224_v12 = vpop.f32.mrb[99].mxu0 }
 0x56b   :  { %v1962_v23 = vadd.f32 %v2222_v20, %v3150_v11  ;;  %v2225_v13 = vadd.f32 %v2224_v12, %v2223_v17 }
 0x56d   :  { %2025 = vst.msk [vmem:[%s3245_s13] sm:$0xff] %vm2024_vm1, %v1962_v23  ;;  %v1965_v14 = vadd.f32 %v2225_v13, %v3150_v11 }
 0x56f   :  { %2026 = vst.msk [vmem:[%s3245_s13 + $0x8] sm:$0xff] %vm2024_vm1, %v1965_v14  ;;  %v2226_v30 = vpop.f32.mrb[100].mxu0 }
 0x570   :  { %v2227_v24 = vpop.f32.mrb[101].mxu0 }
 0x571   :  { %v2228_v15 = vadd.f32 %v2227_v24, %v2226_v30  ;;  %v2229_v18 = vpop.f32.mrb[102].mxu0 }
 0x572   :  { %v2230_v19 = vpop.f32.mrb[103].mxu0 }
 0x573   :  { %v1970_v25 = vadd.f32 %v2228_v15, %v3150_v11  ;;  %v2231_v31 = vadd.f32 %v2230_v19, %v2229_v18 }
 0x575   :  { %2027 = vst.msk [vmem:[%s3245_s13 + $0x10] sm:$0xff] %vm2024_vm1, %v1970_v25  ;;  %v1973_v26 = vadd.f32 %v2231_v31, %v3150_v11 }
 0x577   :  { %2028 = vst.msk [vmem:[%s3245_s13 + $0x18] sm:$0xff] %vm2024_vm1, %v1973_v26  ;;  %v2232_v28 = vpop.f32.mrb[104].mxu0 }
 0x578   :  { %v2233_v32 = vpop.f32.mrb[105].mxu0 }
 0x579   :  { %v2234_v21 = vadd.f32 %v2233_v32, %v2232_v28  ;;  %v2235_v33 = vpop.f32.mrb[106].mxu0 }
 0x57a   :  { %v2236_v22 = vpop.f32.mrb[107].mxu0 }
 0x57b   :  { %v1978_v34 = vadd.f32 %v2234_v21, %v3150_v11  ;;  %v2237_v35 = vadd.f32 %v2236_v22, %v2235_v33 }
 0x57d   :  { %2029 = vst.msk [vmem:[%s3245_s13 + $0x20] sm:$0xff] %vm2024_vm1, %v1978_v34  ;;  %v1981_v36 = vadd.f32 %v2237_v35, %v3150_v11 }
 0x57f   :  { %2030 = vst.msk [vmem:[%s3245_s13 + $0x28] sm:$0xff] %vm2024_vm1, %v1981_v36  ;;  %v2238_v27 = vpop.f32.mrb[64].mxu1 }
 0x580   :  { %v2239_v37 = vpop.f32.mrb[65].mxu1 }
 0x581   :  { %v2240_v38 = vadd.f32 %v2239_v37, %v2238_v27  ;;  %v2241_v29 = vpop.f32.mrb[66].mxu1 }
 0x582   :  { %v2242_v39 = vpop.f32.mrb[67].mxu1 }
 0x583   :  { %v1986_v40 = vadd.f32 %v2240_v38, %v3150_v11  ;;  %v2243_v41 = vadd.f32 %v2242_v39, %v2241_v29 }
 0x585   :  { %2031 = vst.msk [vmem:[%s3245_s13 + $0x30] sm:$0xff] %vm2024_vm1, %v1986_v40  ;;  %v1989_v42 = vadd.f32 %v2243_v41, %v3150_v11 }
 0x587   :  { %2032 = vst.msk [vmem:[%s3245_s13 + $0x38] sm:$0xff] %vm2024_vm1, %v1989_v42  ;;  %v2244_v43 = vpop.f32.mrb[68].mxu1 }
 0x588   :  { %v2245_v44 = vpop.f32.mrb[69].mxu1 }
 0x589   :  { %v2246_v45 = vadd.f32 %v2245_v44, %v2244_v43  ;;  %v2247_v46 = vpop.f32.mrb[70].mxu1 }
 0x58a   :  { %v2248_v47 = vpop.f32.mrb[71].mxu1 }
 0x58b   :  { %v1994_v48 = vadd.f32 %v2246_v45, %v3150_v11  ;;  %v2249_v49 = vadd.f32 %v2248_v47, %v2247_v46 }
 0x58d   :  { %2033 = vst.msk [vmem:[%s3245_s13 + $0x40] sm:$0xff] %vm2024_vm1, %v1994_v48  ;;  %v1997_v50 = vadd.f32 %v2249_v49, %v3150_v11 }
 0x58f   :  { %2034 = vst.msk [vmem:[%s3245_s13 + $0x48] sm:$0xff] %vm2024_vm1, %v1997_v50  ;;  %v2250_v55 = vpop.f32.mrb[72].mxu1 }
 0x590   :  { %v2251_v51 = vpop.f32.mrb[73].mxu1 }
 0x591   :  { %v2252_v52 = vadd.f32 %v2251_v51, %v2250_v55  ;;  %v2253_v56 = vpop.f32.mrb[74].mxu1 }
 0x592   :  { %v2254_v53 = vpop.f32.mrb[75].mxu1 }
 0x593   :  { %v2002_v54 = vadd.f32 %v2252_v52, %v3150_v11  ;;  %v2255_v57 = vadd.f32 %v2254_v53, %v2253_v56 }
 0x595   :  { %2035 = vst.msk [vmem:[%s3245_s13 + $0x50] sm:$0xff] %vm2024_vm1, %v2002_v54  ;;  %v2005_v58 = vadd.f32 %v2255_v57, %v3150_v11 }
 0x597   :  { %2036 = vst.msk [vmem:[%s3245_s13 + $0x58] sm:$0xff] %vm2024_vm1, %v2005_v58  ;;  %v2256_v59 = vpop.f32.mrb[76].mxu1 }
 0x598   :  { %v2257_v60 = vpop.f32.mrb[77].mxu1 }
 0x599   :  { %v2258_v61 = vadd.f32 %v2257_v60, %v2256_v59  ;;  %v2259_v62 = vpop.f32.mrb[78].mxu1 }
 0x59a   :  { %v2260_v63 = vpop.f32.mrb[79].mxu1 }
 0x59b   :  { %v2010_v0 = vadd.f32 %v2258_v61, %v3150_v11  ;;  %v2261_v1 = vadd.f32 %v2260_v63, %v2259_v62 }
 0x59d   :  { %2037 = vst.msk [vmem:[%s3245_s13 + $0x60] sm:$0xff] %vm2024_vm1, %v2010_v0  ;;  %v2013_v2 = vadd.f32 %v2261_v1, %v3150_v11 }
 0x59f   :  { %2038 = vst.msk [vmem:[%s3245_s13 + $0x68] sm:$0xff] %vm2024_vm1, %v2013_v2  ;;  %v2262_v3 = vpop.f32.mrb[80].mxu1 }
 0x5a0   :  { %v2263_v4 = vpop.f32.mrb[81].mxu1 }
 0x5a1   :  { %v2264_v5 = vadd.f32 %v2263_v4, %v2262_v3  ;;  %v2265_v6 = vpop.f32.mrb[82].mxu1 }
 0x5a2   :  { %v2266_v7 = vpop.f32.mrb[83].mxu1 }
 0x5a3   :  { %v2018_v8 = vadd.f32 %v2264_v5, %v3150_v11  ;;  %v2267_v9 = vadd.f32 %v2266_v7, %v2265_v6 }
 0x5a5   :  { %2039 = vst.msk [vmem:[%s3245_s13 + $0x70] sm:$0xff] %vm2024_vm1, %v2018_v8  ;;  %v2021_v10 = vadd.f32 %v2267_v9, %v3150_v11 }
 0x5a7   :  { %2040 = vst.msk [vmem:[%s3245_s13 + $0x78] sm:$0xff] %vm2024_vm1, %v2021_v10 }
 0x5a8   :  { %2045 = vsyncpa [#allocation3], 1 }
 0x5a9   :  { %2046 = vsyncpa [#allocation5], 1 }

</bundles_post_ra>
